<compile_context>
chip_gen: v7x
topology: tpu7x:2x2x1
jax: 0.10.0
libtpu: 0.0.40
codegen_flags: <defaults>
</compile_context>

<pallas_src>
import functools

import jax
import jax.numpy as jnp
from jax import lax
from jax.experimental import pallas as pl
from jax.experimental.pallas import tpu as pltpu


def _round_up(x, m):
    return (x + m - 1) // m * m


def _stnm_kernel(grid_ref, canvas_ref, im_ref, out_ref, *, Hin, Win, C):
    Q = Hin * Win
    TILE_P = out_ref.shape[-1]

    g = grid_ref[...]                        # (2, TILE_P)
    gx = g[0:1, :]                           # (1, TILE_P) width coord in [-1, 1]
    gy = g[1:2, :]                           # (1, TILE_P) height coord in [-1, 1]

    # align_corners=False unnormalization (PyTorch grid_sample semantics).
    ix = ((gx + 1.0) * Win - 1.0) * 0.5
    iy = ((gy + 1.0) * Hin - 1.0) * 0.5

    x0f = jnp.floor(ix)
    y0f = jnp.floor(iy)
    dx = ix - x0f
    dy = iy - y0f
    x0 = x0f.astype(jnp.int32)
    y0 = y0f.astype(jnp.int32)
    x1 = x0 + 1
    y1 = y0 + 1

    # padding_mode='zeros': out-of-bounds corners get zero weight, so any index
    # aliasing across row boundaries in the flat q axis contributes nothing.
    vx0 = (x0 >= 0) & (x0 < Win)
    vx1 = (x1 >= 0) & (x1 < Win)
    vy0 = (y0 >= 0) & (y0 < Hin)
    vy1 = (y1 >= 0) & (y1 < Hin)

    zero = jnp.zeros((), jnp.float32)
    w00 = jnp.where(vy0 & vx0, (1.0 - dy) * (1.0 - dx), zero)   # (1, TILE_P)
    w01 = jnp.where(vy0 & vx1, (1.0 - dy) * dx, zero)
    w10 = jnp.where(vy1 & vx0, dy * (1.0 - dx), zero)
    w11 = jnp.where(vy1 & vx1, dy * dx, zero)

    # The four corners live at offsets {0, 1, Win, Win+1} from the top-left
    # corner's flat index, so one (Q, TILE_P) difference tensor suffices.
    i00 = y0 * Win + x0                                          # (1, TILE_P)
    q_iota = lax.broadcasted_iota(jnp.int32, (Q, TILE_P), 0)
    d = q_iota - i00                                             # (Q, TILE_P)

    S = jnp.where(d == 0, w00, zero)
    S = S + jnp.where(d == 1, w01, zero)
    S = S + jnp.where(d == Win, w10, zero)
    S = S + jnp.where(d == Win + 1, w11, zero)

    # Single MXU matmul for [image; mask] -> split afterwards.
    res = jnp.dot(im_ref[...].astype(jnp.float32), S,
                  preferred_element_type=jnp.float32)            # (C+Cm, TILE_P)
    ti = res[:C, :]
    tm = res[C:, :]                                              # broadcasts if Cm == 1

    cv = canvas_ref[...].astype(jnp.float32)
    out_ref[...] = (tm * ti + (1.0 - tm) * cv).astype(out_ref.dtype)


def stnm(canvas, image, mask, grid, *, tile_p=None):
    N, C, Ho, Wo = canvas.shape
    _, Ci, Hin, Win = image.shape
    Cm = mask.shape[1]
    assert Ci == C, "image channels must match canvas channels"
    assert Cm == C or Cm == 1, "mask channels must equal image channels or be 1"
    P = Ho * Wo
    Q = Hin * Win

    if tile_p is None:
        # Keep the (Q, TILE_P) f32 sampling slab around <= 4 MiB so that
        # S + compare intermediates + resident [image; mask] + double-buffered
        # canvas/out tiles stay well inside v7x's 64 MiB VMEM (and leave
        # headroom on v5e/v6e).  Larger tiles amortize per-step overhead.
        budget = 4 * 1024 * 1024
        tile_p = max(128, min(1024, (budget // (Q * 4)) // 128 * 128))
    tile_p = min(tile_p, _round_up(P, 128))
    P_pad = _round_up(P, tile_p)

    canvas_f = canvas.reshape(N, C, P)
    image_f = image.reshape(N, C, Q)
    mask_f = mask.reshape(N, Cm, Q)
    im_f = jnp.concatenate([image_f, mask_f], axis=1)            # (N, C+Cm, Q)
    grid_f = jnp.transpose(grid.reshape(N, P, 2), (0, 2, 1))     # (N, 2, P)

    if P_pad != P:
        pad = P_pad - P
        canvas_f = jnp.pad(canvas_f, ((0, 0), (0, 0), (0, pad)))
        # Pad coordinates with -2.0 -> every corner out of bounds -> zero S
        # columns; padded outputs are sliced off below anyway.
        grid_f = jnp.pad(grid_f, ((0, 0), (0, 0), (0, pad)),
                         constant_values=-2.0)

    kernel = functools.partial(_stnm_kernel, Hin=Hin, Win=Win, C=C)

    out = pl.pallas_call(
        kernel,
        out_shape=jax.ShapeDtypeStruct((N, C, P_pad), canvas.dtype),
        grid_spec=pltpu.PrefetchScalarGridSpec(
            num_scalar_prefetch=0,
            grid=(N, P_pad // tile_p),
            in_specs=[
                # grid coords: tiled along P, batch dim squeezed.
                pl.BlockSpec((None, 2, tile_p), lambda b, p: (b, 0, p)),
                # canvas: tiled along P.
                pl.BlockSpec((None, C, tile_p), lambda b, p: (b, 0, p)),
                # [image; mask]: p-invariant index_map -> stays resident.
                pl.BlockSpec((None, C + Cm, Q), lambda b, p: (b, 0, 0)),
            ],
            out_specs=pl.BlockSpec((None, C, tile_p), lambda b, p: (b, 0, p)),
        ),
        compiler_params=pltpu.CompilerParams(
            dimension_semantics=("parallel", "parallel"),
            vmem_limit_bytes=48 * 1024 * 1024,
        ),
    )(grid_f, canvas_f, im_f)

    out = out[:, :, :P]
    return out.reshape(N, C, Ho, Wo)


def _grid_sample_ref(x, grid):
    """Pure-JAX reference of F.grid_sample(bilinear, zeros, align_corners=False)."""
    def one(xn, gn):
        _, Hin, Win = xn.shape
        gx = gn[..., 0]
        gy = gn[..., 1]
        ix = ((gx + 1.0) * Win - 1.0) * 0.5
        iy = ((gy + 1.0) * Hin - 1.0) * 0.5
        x0 = jnp.floor(ix).astype(jnp.int32)
        y0 = jnp.floor(iy).astype(jnp.int32)
        x1 = x0 + 1
        y1 = y0 + 1
        dx = ix - x0
        dy = iy - y0

        def g(xi, yi, w):
            valid = (xi >= 0) & (xi < Win) & (yi >= 0) & (yi < Hin)
            xc = jnp.clip(xi, 0, Win - 1)
            yc = jnp.clip(yi, 0, Hin - 1)
            return xn[:, yc, xc] * (w * valid)[None]

        return (g(x0, y0, (1.0 - dy) * (1.0 - dx))
                + g(x1, y0, (1.0 - dy) * dx)
                + g(x0, y1, dy * (1.0 - dx))
                + g(x1, y1, dy * dx))

    return jax.vmap(one)(x, grid)


def _stnm_ref(canvas, image, mask, grid):
    ti = _grid_sample_ref(image, grid)
    tm = _grid_sample_ref(mask, grid)
    return tm * ti + (1.0 - tm) * canvas


if __name__ == "__main__":
    N, C, H, W = 2, 4, 16, 16
    key = jax.random.PRNGKey(0)
    k1, k2, k3, k4 = jax.random.split(key, 4)

    canvas = jax.random.normal(k1, (N, C, H, W), dtype=jnp.float32)
    image = jax.random.normal(k2, (N, C, H, W), dtype=jnp.float32)
    mask = jax.random.uniform(k3, (N, C, H, W), dtype=jnp.float32)
    # sampling grid slightly outside [-1, 1] to exercise zero padding
    grid = jax.random.uniform(k4, (N, H, W, 2), dtype=jnp.float32,
                              minval=-1.2, maxval=1.2)

    out = stnm(canvas, image, mask, grid)
    jax.block_until_ready(out)

    ref = _stnm_ref(canvas, image, mask, grid)
    if not jnp.allclose(out, ref, atol=1e-4, rtol=1e-4):
        raise AssertionError("Pallas STNM does not match reference")

    print("KERNEL_OK")
</pallas_src>

<mosaic_0001>
module attributes {stable_mosaic.version = 11 : i64} {
  func.func @_stnm_kernel(%arg0: i32, %arg1: i32, %arg2: memref<1x2x256xf32, #tpu.memory_space<vmem>>, %arg3: memref<1x4x256xf32, #tpu.memory_space<vmem>>, %arg4: memref<1x8x256xf32, #tpu.memory_space<vmem>>, %arg5: memref<1x4x256xf32, #tpu.memory_space<vmem>>) attributes {dimension_semantics = [#tpu.dimension_semantics<parallel>, #tpu.dimension_semantics<parallel>], iteration_bounds = array<i64: 2, 1>, scalar_prefetch = 0 : i64, scratch_operands = 0 : i64, tpu.core_type = #tpu.core_type<tc>, window_params = [{transform_indices = @transform_0, window_bounds = array<i64: 1, 2, 256>}, {transform_indices = @transform_1, window_bounds = array<i64: 1, 4, 256>}, {transform_indices = @transform_2, window_bounds = array<i64: 1, 8, 256>}, {transform_indices = @transform_3, window_bounds = array<i64: 1, 4, 256>}]} {
    %c0 = arith.constant 0 : index
    %c0_0 = arith.constant 0 : index
    %c0_1 = arith.constant 0 : index
    %0 = vector.load %arg2[%c0, %c0_0, %c0_1] : memref<1x2x256xf32, #tpu.memory_space<vmem>>, vector<1x2x256xf32>
    %1 = vector.shape_cast %0 : vector<1x2x256xf32> to vector<2x256xf32>
    %2 = vector.extract_strided_slice %1 {offsets = [0, 0], sizes = [1, 256], strides = [1, 1]} : vector<2x256xf32> to vector<1x256xf32>
    %3 = vector.extract_strided_slice %1 {offsets = [1, 0], sizes = [1, 256], strides = [1, 1]} : vector<2x256xf32> to vector<1x256xf32>
    %cst = arith.constant 1.000000e+00 : f32
    %4 = vector.broadcast %cst : f32 to vector<1x256xf32>
    %5 = arith.addf %2, %4 : vector<1x256xf32>
    %cst_2 = arith.constant 1.600000e+01 : f32
    %6 = vector.broadcast %cst_2 : f32 to vector<1x256xf32>
    %7 = arith.mulf %5, %6 : vector<1x256xf32>
    %cst_3 = arith.constant 1.000000e+00 : f32
    %8 = vector.broadcast %cst_3 : f32 to vector<1x256xf32>
    %9 = arith.subf %7, %8 : vector<1x256xf32>
    %cst_4 = arith.constant 5.000000e-01 : f32
    %10 = vector.broadcast %cst_4 : f32 to vector<1x256xf32>
    %11 = arith.mulf %9, %10 : vector<1x256xf32>
    %cst_5 = arith.constant 1.000000e+00 : f32
    %12 = vector.broadcast %cst_5 : f32 to vector<1x256xf32>
    %13 = arith.addf %3, %12 : vector<1x256xf32>
    %cst_6 = arith.constant 1.600000e+01 : f32
    %14 = vector.broadcast %cst_6 : f32 to vector<1x256xf32>
    %15 = arith.mulf %13, %14 : vector<1x256xf32>
    %cst_7 = arith.constant 1.000000e+00 : f32
    %16 = vector.broadcast %cst_7 : f32 to vector<1x256xf32>
    %17 = arith.subf %15, %16 : vector<1x256xf32>
    %cst_8 = arith.constant 5.000000e-01 : f32
    %18 = vector.broadcast %cst_8 : f32 to vector<1x256xf32>
    %19 = arith.mulf %17, %18 : vector<1x256xf32>
    %20 = math.floor %11 : vector<1x256xf32>
    %21 = math.floor %19 : vector<1x256xf32>
    %22 = arith.subf %11, %20 : vector<1x256xf32>
    %23 = arith.subf %19, %21 : vector<1x256xf32>
    %24 = arith.fptosi %20 : vector<1x256xf32> to vector<1x256xi32>
    %25 = arith.fptosi %21 : vector<1x256xf32> to vector<1x256xi32>
    %c1_i32 = arith.constant 1 : i32
    %26 = vector.broadcast %c1_i32 : i32 to vector<1x256xi32>
    %27 = arith.addi %24, %26 : vector<1x256xi32>
    %c1_i32_9 = arith.constant 1 : i32
    %28 = vector.broadcast %c1_i32_9 : i32 to vector<1x256xi32>
    %29 = arith.addi %25, %28 : vector<1x256xi32>
    %c0_i32 = arith.constant 0 : i32
    %30 = vector.broadcast %c0_i32 : i32 to vector<1x256xi32>
    %31 = arith.cmpi sge, %24, %30 : vector<1x256xi32>
    %c16_i32 = arith.constant 16 : i32
    %32 = vector.broadcast %c16_i32 : i32 to vector<1x256xi32>
    %33 = arith.cmpi slt, %24, %32 : vector<1x256xi32>
    %34 = arith.andi %31, %33 : vector<1x256xi1>
    %c0_i32_10 = arith.constant 0 : i32
    %35 = vector.broadcast %c0_i32_10 : i32 to vector<1x256xi32>
    %36 = arith.cmpi sge, %27, %35 : vector<1x256xi32>
    %c16_i32_11 = arith.constant 16 : i32
    %37 = vector.broadcast %c16_i32_11 : i32 to vector<1x256xi32>
    %38 = arith.cmpi slt, %27, %37 : vector<1x256xi32>
    %39 = arith.andi %36, %38 : vector<1x256xi1>
    %c0_i32_12 = arith.constant 0 : i32
    %40 = vector.broadcast %c0_i32_12 : i32 to vector<1x256xi32>
    %41 = arith.cmpi sge, %25, %40 : vector<1x256xi32>
    %c16_i32_13 = arith.constant 16 : i32
    %42 = vector.broadcast %c16_i32_13 : i32 to vector<1x256xi32>
    %43 = arith.cmpi slt, %25, %42 : vector<1x256xi32>
    %44 = arith.andi %41, %43 : vector<1x256xi1>
    %c0_i32_14 = arith.constant 0 : i32
    %45 = vector.broadcast %c0_i32_14 : i32 to vector<1x256xi32>
    %46 = arith.cmpi sge, %29, %45 : vector<1x256xi32>
    %c16_i32_15 = arith.constant 16 : i32
    %47 = vector.broadcast %c16_i32_15 : i32 to vector<1x256xi32>
    %48 = arith.cmpi slt, %29, %47 : vector<1x256xi32>
    %49 = arith.andi %46, %48 : vector<1x256xi1>
    %50 = arith.andi %44, %34 : vector<1x256xi1>
    %cst_16 = arith.constant 1.000000e+00 : f32
    %51 = vector.broadcast %cst_16 : f32 to vector<1x256xf32>
    %52 = arith.subf %51, %23 : vector<1x256xf32>
    %cst_17 = arith.constant 1.000000e+00 : f32
    %53 = vector.broadcast %cst_17 : f32 to vector<1x256xf32>
    %54 = arith.subf %53, %22 : vector<1x256xf32>
    %55 = arith.mulf %52, %54 : vector<1x256xf32>
    %cst_18 = arith.constant 0.000000e+00 : f32
    %56 = vector.broadcast %cst_18 : f32 to vector<1x256xf32>
    %57 = arith.select %50, %55, %56 : vector<1x256xi1>, vector<1x256xf32>
    %58 = arith.andi %44, %39 : vector<1x256xi1>
    %cst_19 = arith.constant 1.000000e+00 : f32
    %59 = vector.broadcast %cst_19 : f32 to vector<1x256xf32>
    %60 = arith.subf %59, %23 : vector<1x256xf32>
    %61 = arith.mulf %60, %22 : vector<1x256xf32>
    %cst_20 = arith.constant 0.000000e+00 : f32
    %62 = vector.broadcast %cst_20 : f32 to vector<1x256xf32>
    %63 = arith.select %58, %61, %62 : vector<1x256xi1>, vector<1x256xf32>
    %64 = arith.andi %49, %34 : vector<1x256xi1>
    %cst_21 = arith.constant 1.000000e+00 : f32
    %65 = vector.broadcast %cst_21 : f32 to vector<1x256xf32>
    %66 = arith.subf %65, %22 : vector<1x256xf32>
    %67 = arith.mulf %23, %66 : vector<1x256xf32>
    %cst_22 = arith.constant 0.000000e+00 : f32
    %68 = vector.broadcast %cst_22 : f32 to vector<1x256xf32>
    %69 = arith.select %64, %67, %68 : vector<1x256xi1>, vector<1x256xf32>
    %70 = arith.andi %49, %39 : vector<1x256xi1>
    %71 = arith.mulf %23, %22 : vector<1x256xf32>
    %cst_23 = arith.constant 0.000000e+00 : f32
    %72 = vector.broadcast %cst_23 : f32 to vector<1x256xf32>
    %73 = arith.select %70, %71, %72 : vector<1x256xi1>, vector<1x256xf32>
    %c16_i32_24 = arith.constant 16 : i32
    %74 = vector.broadcast %c16_i32_24 : i32 to vector<1x256xi32>
    %75 = arith.muli %25, %74 : vector<1x256xi32>
    %76 = arith.addi %75, %24 : vector<1x256xi32>
    %77 = tpu.iota {dimensions = array<i32: 0>} : vector<256x256xi32>
    %78 = vector.broadcast %76 : vector<1x256xi32> to vector<256x256xi32>
    %79 = arith.subi %77, %78 : vector<256x256xi32>
    %c0_i32_25 = arith.constant 0 : i32
    %80 = vector.broadcast %c0_i32_25 : i32 to vector<256x256xi32>
    %81 = arith.cmpi eq, %79, %80 : vector<256x256xi32>
    %cst_26 = arith.constant 0.000000e+00 : f32
    %82 = vector.shape_cast %57 : vector<1x256xf32> to vector<1x256xf32>
    %83 = vector.broadcast %82 : vector<1x256xf32> to vector<256x256xf32>
    %84 = vector.broadcast %cst_26 : f32 to vector<256x256xf32>
    %85 = arith.select %81, %83, %84 : vector<256x256xi1>, vector<256x256xf32>
    %c1_i32_27 = arith.constant 1 : i32
    %86 = vector.broadcast %c1_i32_27 : i32 to vector<256x256xi32>
    %87 = arith.cmpi eq, %79, %86 : vector<256x256xi32>
    %cst_28 = arith.constant 0.000000e+00 : f32
    %88 = vector.shape_cast %63 : vector<1x256xf32> to vector<1x256xf32>
    %89 = vector.broadcast %88 : vector<1x256xf32> to vector<256x256xf32>
    %90 = vector.broadcast %cst_28 : f32 to vector<256x256xf32>
    %91 = arith.select %87, %89, %90 : vector<256x256xi1>, vector<256x256xf32>
    %92 = arith.addf %85, %91 : vector<256x256xf32>
    %c16_i32_29 = arith.constant 16 : i32
    %93 = vector.broadcast %c16_i32_29 : i32 to vector<256x256xi32>
    %94 = arith.cmpi eq, %79, %93 : vector<256x256xi32>
    %cst_30 = arith.constant 0.000000e+00 : f32
    %95 = vector.shape_cast %69 : vector<1x256xf32> to vector<1x256xf32>
    %96 = vector.broadcast %95 : vector<1x256xf32> to vector<256x256xf32>
    %97 = vector.broadcast %cst_30 : f32 to vector<256x256xf32>
    %98 = arith.select %94, %96, %97 : vector<256x256xi1>, vector<256x256xf32>
    %99 = arith.addf %92, %98 : vector<256x256xf32>
    %c17_i32 = arith.constant 17 : i32
    %100 = vector.broadcast %c17_i32 : i32 to vector<256x256xi32>
    %101 = arith.cmpi eq, %79, %100 : vector<256x256xi32>
    %cst_31 = arith.constant 0.000000e+00 : f32
    %102 = vector.shape_cast %73 : vector<1x256xf32> to vector<1x256xf32>
    %103 = vector.broadcast %102 : vector<1x256xf32> to vector<256x256xf32>
    %104 = vector.broadcast %cst_31 : f32 to vector<256x256xf32>
    %105 = arith.select %101, %103, %104 : vector<256x256xi1>, vector<256x256xf32>
    %106 = arith.addf %99, %105 : vector<256x256xf32>
    %c0_32 = arith.constant 0 : index
    %c0_33 = arith.constant 0 : index
    %c0_34 = arith.constant 0 : index
    %107 = vector.load %arg4[%c0_32, %c0_33, %c0_34] : memref<1x8x256xf32, #tpu.memory_space<vmem>>, vector<1x8x256xf32>
    %108 = vector.shape_cast %107 : vector<1x8x256xf32> to vector<8x256xf32>
    %cst_35 = arith.constant dense<0.000000e+00> : vector<8x256xf32>
    %109 = tpu.matmul %108, %106, %cst_35 {dimension_numbers = #tpu.dot_dimension_numbers<[1], [0], [0], [1], [0, 0, 1, 1], [], []>} : vector<8x256xf32>, vector<256x256xf32>, vector<8x256xf32> -> vector<8x256xf32>
    %110 = vector.extract_strided_slice %109 {offsets = [0, 0], sizes = [4, 256], strides = [1, 1]} : vector<8x256xf32> to vector<4x256xf32>
    %111 = vector.extract_strided_slice %109 {offsets = [4, 0], sizes = [4, 256], strides = [1, 1]} : vector<8x256xf32> to vector<4x256xf32>
    %c0_36 = arith.constant 0 : index
    %c0_37 = arith.constant 0 : index
    %c0_38 = arith.constant 0 : index
    %112 = vector.load %arg3[%c0_36, %c0_37, %c0_38] : memref<1x4x256xf32, #tpu.memory_space<vmem>>, vector<1x4x256xf32>
    %113 = vector.shape_cast %112 : vector<1x4x256xf32> to vector<4x256xf32>
    %114 = arith.mulf %111, %110 : vector<4x256xf32>
    %cst_39 = arith.constant 1.000000e+00 : f32
    %115 = vector.broadcast %cst_39 : f32 to vector<4x256xf32>
    %116 = arith.subf %115, %111 : vector<4x256xf32>
    %117 = arith.mulf %116, %113 : vector<4x256xf32>
    %118 = arith.addf %114, %117 : vector<4x256xf32>
    %c0_40 = arith.constant 0 : index
    %c0_41 = arith.constant 0 : index
    %c0_42 = arith.constant 0 : index
    %119 = vector.load %arg5[%c0_40, %c0_41, %c0_42] : memref<1x4x256xf32, #tpu.memory_space<vmem>>, vector<1x4x256xf32>
    %120 = vector.shape_cast %119 : vector<1x4x256xf32> to vector<4x256xf32>
    %121 = vector.shape_cast %118 : vector<4x256xf32> to vector<1x4x256xf32>
    tpu.vector_store %arg5[%c0_40, %c0_41, %c0_42], %121 {strides = array<i32>} : memref<1x4x256xf32, #tpu.memory_space<vmem>>, vector<1x4x256xf32>,
    return
  }
  func.func @transform_0(%arg0: i32, %arg1: i32) -> (i32, i32, i32) {
    %c0_i32 = arith.constant 0 : i32
    %c0_i32_0 = arith.constant 0 : i32
    return %arg0, %c0_i32, %arg1 : i32, i32, i32
  }
  func.func @transform_1(%arg0: i32, %arg1: i32) -> (i32, i32, i32) {
    %c0_i32 = arith.constant 0 : i32
    %c0_i32_0 = arith.constant 0 : i32
    return %arg0, %c0_i32, %arg1 : i32, i32, i32
  }
  func.func @transform_2(%arg0: i32, %arg1: i32) -> (i32, i32, i32) {
    %c0_i32 = arith.constant 0 : i32
    %c0_i32_0 = arith.constant 0 : i32
    %c0_i32_1 = arith.constant 0 : i32
    return %arg0, %c0_i32, %c0_i32_0 : i32, i32, i32
  }
  func.func @transform_3(%arg0: i32, %arg1: i32) -> (i32, i32, i32) {
    %c0_i32 = arith.constant 0 : i32
    %c0_i32_0 = arith.constant 0 : i32
    return %arg0, %c0_i32, %arg1 : i32, i32, i32
  }
}

</mosaic_0001>

<bundles_post_ra>
// kernel: tpu_custom_call.1
= control target key start
LH: loop header
LB: loop body
LE: loop exit
PB: predicated region body
PF: predicated region fallthrough
CT: control target
= control target key end

     0   :  { %s2610_s0 = inlined_call_operand.hbm [shape: f32[2,2,256], index: 0, kind: input, shape index: {}]   ;;  %s2611_s1 = inlined_call_operand.hbm [shape: f32[2,4,256], index: 1, kind: input, shape index: {}]   ;;  %s2612_s2 = inlined_call_operand.hbm [shape: f32[2,8,256], index: 2, kind: input, shape index: {}]   ;;  %s2613_s3 = inlined_call_operand.hbm [shape: f32[2,4,256], index: 3, kind: output, shape index: {}]  }
   0x1   :  { %2620 = sst [smem:[#allocation15_spill]] %s2610_s0 }
   0x2   :  { %2621 = sst [smem:[#allocation16_spill]] %s2611_s1 }
   0x3   :  { %8 = vsyncpa [#allocation3], 0 }
   0x4   :  { %10 = vsyncpa [#allocation3 + $0x1], 0 }
   0x5   :  { %11 = vsyncpa [#allocation6], 0 }
   0x6   :  { %13 = vsyncpa [#allocation6 + $0x1], 0 }
   0x7   :  { %14 = vsyncpa [#allocation4], 0 }
   0x8   :  { %16 = vsyncpa [#allocation4 + $0x1], 0  ;;  %s1835_s12 = smov 0   ;;  %s1837_s13 = smov 0  }
   0x9   :  { %s1839_s14 = smov 0   ;;  %s1841_s15 = smov 0  }
   0xa   :  { %s1843_s16 = smov 0   ;;  %s1845_s17 = smov 0  }
   0xb LB: > { %2622 = sst [smem:[#allocation12_spill]] %s1796_s14  ;;  %s1866_s18 = sadd.s32 4294967295, %s1808_s17   ;;  %s1808_s17 = sphi %s1845_s17, %s22_s17   ;;  %s1804_s16 = sphi %s1843_s16, %s2656_s16   ;;  %s1800_s15 = sphi %s1841_s15, %s2655_s15   ;;  %s1796_s14 = sphi %s1839_s14, %s2651_s14   ;;  %s1792_s13 = sphi %s1837_s13, %s2654_s13   ;;  %s1788_s12 = sphi %s1835_s12, %s2653_s12  }
   0xc   : > { %s1465_s19 = sadd.s32 4294967294, %s1808_s17   ;;  %s34_s20 = sadd.s32 1, %s1804_s16 }
   0xd   : > { %s43_s21 = sadd.s32 1, %s1796_s14  ;;  %p36_p0 = scmp.ge.s32.totalorder %s34_s20, 2 }
   0xe   : > { %p50_p1 = scmp.ne.s32.totalorder %s1796_s14, %s1792_s13  ;;  %p51_p2 = scmp.eq.s32.totalorder %s1808_s17, 0 }
   0xf   : > { %p56_p3 = scmp.ne.s32.totalorder %s1792_s13, %s1788_s12  ;;  %s2658_s20 = smov (%p36_p0, %s34_s20), 0 }
  0x10   : > { %2623 = sst [smem:[#allocation13_spill]] %s2658_s20  ;;  %p1878_p4 = por %p51_p2, %p50_p1 }
  0x11   : > { %p57_p5 = scmp.eq.s32.totalorder %s1866_s18, 0  ;;  %s38_s23 = ssub.s32 %s1804_s16, %s2658_s20 }
  0x12   : > { %p136_p6 = scmp.eq.s32.totalorder %s1866_s18, 1  ;;  %p41_p7 = scmp.eq.s32.totalorder %s38_s23, 0 }
  0x13   : > { %p1886_p8 = por %p57_p5, %p56_p3  ;;  %p142_p10 = scmp.eq.s32.totalorder %s1465_s19, 1 }
  0x14   : > { %p1890_p9 = por %p136_p6, %p50_p1  ;;  %p1580_p13 = scmp.lt.s32.totalorder %s1808_s17, 2 }
  0x15   : > { %s2625_s24 = scalar_select %p1886_p8, 1, 0 }
  0x16   : > { %s2626_s25 = scalar_select %p1890_p9, 1, 0 }
  0x17   : > { %s1895_s26 = scalar_select %p41_p7, %s1796_s14, %s43_s21  }
  0x18   : > { %p1897_p11 = por %p142_p10, %p56_p3  ;;  %s1904_s28 = sand.u32 1, %s1796_s14  }
  0x19   : > { %2627 = sst [smem:[#allocation14_spill]] %s1895_s26  ;;  %s183_s29 = sand.u32 1, %s1808_s17  }
  0x1a   : > { %s2628_s27 = scalar_select %p1897_p11, 1, 0 }
  0x1b   : > { %s1471_s30 = sshll.u32 %s1904_s28, 3  ;;  %p1910_p0 = pnand %p1580_p13, %p1878_p4 }
  0x1c   : > { %s1489_s5 = sshll.u32 %s1804_s16, 7  ;;  %s2630_s1 = sld [smem:[#allocation16_spill]] }
  0x1d   : > { %s2629_s4 = scalar_select %p1910_p0, 1, 0 }
  0x1e   : > { %s187_s9 = scalar_lea.vmem [#allocation5], %s1471_s30  ;;  %s1924_s11 = scalar_lea.sflag [#allocation6], %s183_s29 }
  0x1f   : > { %s197_s10 = sshll.u32 %s187_s9, 4  ;;  %p1930_p4 = pneg %p1910_p0  ;;  %s1921_s10 = int_to_ptr.vmem [resolvable:$true] %s197_s10 }
  0x22   : > { %s1918_s8 = scalar_lea.hbm %s2630_s1, %s1489_s5  ;;  %s1637_s30 = scalar_lea.hbm %s2630_s1, 256 }
  0x23   : > { %s1632_s19 = scalar_lea.hbm %s1918_s8, 128  ;;  %p1638_p7 = scmp.lt.u32.totalorder %s1918_s8, %s2630_s1 }
  0x24   : > { %p1633_p3 = scmp.ne.s32.totalorder %s1918_s8, %s1632_s19  ;;  %p1639_p10 = scmp.lt.u32.totalorder %s1637_s30, %s1632_s19 }
  0x25   : > { %p1641_p12 = scmp.lt.u32.totalorder %s1632_s19, %s1918_s8 }
  0x26   : > { %p1635_p5 = pnand %p1930_p4, %p1633_p3  ;;  %p1640_p13 = por %p1639_p10, %p1638_p7 }
  0x28   : > { %p1636_p6 = pneg %p1635_p5  ;;  %p1642_p1 = por %p1641_p12, %p1640_p13 }
  0x2a   : > { %p1643_p2 = pnand %p1642_p1, %p1636_p6 }
  0x2c   : > { %1646 = shalt.err (!%p1643_p2)
}
  0x2d   : > { %s1647_s29 = scalar_lea.vmem %s1921_s10, 128  ;;  %s1810_s7 = smov [#allocation5]  }
  0x2e   : > { %p1648_p3 = scmp.ne.s32.totalorder %s1921_s10, %s1647_s29  ;;  %s1652_s9 = sshll.u32 %s1810_s7, 4  ;;  %s1653_s9 = int_to_ptr.vmem [resolvable:$false] %s1652_s9 }
  0x2f   : > { %s1654_s22 = scalar_lea.vmem %s1653_s9, 256  ;;  %p1655_p9 = scmp.lt.s32.totalorder %s1921_s10, %s1653_s9 }
  0x30   : > { %p1650_p5 = pnand %p1648_p3, %p1930_p4  ;;  %p1656_p8 = scmp.lt.s32.totalorder %s1654_s22, %s1647_s29 }
  0x32   : > { %p1651_p11 = pneg %p1650_p5  ;;  %p1657_p7 = por %p1656_p8, %p1655_p9 }
  0x34   : > { %p1658_p10 = pnand %p1657_p7, %p1651_p11 }
  0x36   : > { %1661 = shalt.err (!%p1658_p10)
}
  0x37   : > { %1572 = dma.hbm_to_vmem [thread:$0]  (!%p1910_p0), %s1918_s8, 128, %s1921_s10, %s1924_s11  }
  0x38   : > { %p2632_p12 = scmp.lt.s32.totalorder %s1808_s17, 3  ;;  %p2633_p1 = scmp.ge.s32.totalorder %s1808_s17, 1 }
  0x39   : > { %s1468_s23 = sshll.u32 %s1904_s28, 2  ;;  %s1488_s30 = sshll.u32 %s1804_s16, 6 }
  0x3a   : > { %p1958_p2 = pnand %p2633_p1, %p2632_p12  ;;  %s2635_s0 = sld [smem:[#allocation15_spill]] }
  0x3b   : > { %s166_s7 = scalar_lea.vmem [#allocation2], %s1468_s23  ;;  %s163_s10 = scalar_lea.sflag [#allocation3], %s1904_s28 }
  0x3c   : > { %s2634_s19 = scalar_select %p1958_p2, 1, 0 }
  0x3d   : > { %s176_s9 = sshll.u32 %s166_s7, 4  ;;  %s177_s9 = int_to_ptr.vmem [resolvable:$true] %s176_s9 }
  0x40   : > { %s1967_s29 = scalar_lea.hbm %s2635_s0, %s1488_s30  ;;  %s1667_s5 = scalar_lea.hbm %s2635_s0, 128 }
  0x41   : > { %s1662_s22 = scalar_lea.hbm %s1967_s29, 64  ;;  %p1668_p6 = scmp.lt.u32.totalorder %s1967_s29, %s2635_s0 }
  0x42   : > { %p1663_p8 = scmp.ne.s32.totalorder %s1967_s29, %s1662_s22  ;;  %p1669_p13 = scmp.lt.u32.totalorder %s1667_s5, %s1662_s22 }
  0x43   : > { %p1671_p5 = scmp.lt.u32.totalorder %s1662_s22, %s1967_s29 }
  0x44   : > { %p1665_p9 = pnand %p1663_p8, %p1930_p4  ;;  %p1670_p3 = por %p1669_p13, %p1668_p6 }
  0x46   : > { %p1666_p11 = pneg %p1665_p9  ;;  %p1672_p7 = por %p1671_p5, %p1670_p3 }
  0x48   : > { %p1673_p10 = pnand %p1672_p7, %p1666_p11 }
  0x4a   : > { %1676 = shalt.err (!%p1673_p10)
}
  0x4b   : > { %s1677_s23 = scalar_lea.vmem %s177_s9, 64  ;;  %s1811_s7 = smov [#allocation2]  }
  0x4c   : > { %p1678_p12 = scmp.ne.s32.totalorder %s177_s9, %s1677_s23  ;;  %s1682_s8 = sshll.u32 %s1811_s7, 4  ;;  %s1683_s8 = int_to_ptr.vmem [resolvable:$false] %s1682_s8 }
  0x4d   : > { %s1684_s1 = scalar_lea.vmem %s1683_s8, 128  ;;  %p1685_p9 = scmp.lt.s32.totalorder %s177_s9, %s1683_s8 }
  0x4e   : > { %p1680_p1 = pnand %p1678_p12, %p1930_p4  ;;  %p1686_p2 = scmp.lt.s32.totalorder %s1684_s1, %s1677_s23 }
  0x50   : > { %p1681_p8 = pneg %p1680_p1  ;;  %p1687_p0 = por %p1686_p2, %p1685_p9 }
  0x52   : > { %p1688_p6 = pnand %p1687_p0, %p1681_p8 }
  0x54   : > { %1691 = shalt.err (!%p1688_p6)
}
  0x55   : > { %p2636_p13 = scmp.ne.s32.totalorder %s2629_s4, 0  ;;  %s1490_s20 = sshll.u32 %s1804_s16, 8 }
  0x56   : > { %s2637_s22 = sshll.u32 %s1904_s28, 4  ;;  %s214_s0 = scalar_lea.hbm %s2612_s2, %s1490_s20 }
  0x57   : > { %1569 = dma.hbm_to_vmem [thread:$0]  (!%p2636_p13), %s1967_s29, 64, %s177_s9, %s163_s10  }
  0x58   : > { %s208_s5 = scalar_lea.vmem [#allocation7], %s2637_s22  ;;  %s1692_s8 = scalar_lea.hbm %s214_s0, 256 }
  0x59   : > { %s216_s30 = sshll.u32 %s208_s5, 4  ;;  %p1693_p2 = scmp.ne.s32.totalorder %s214_s0, %s1692_s8  ;;  %s217_s30 = int_to_ptr.vmem [resolvable:$true] %s216_s30 }
  0x5a   : > { %s1697_s26 = scalar_lea.hbm %s2612_s2, 512  ;;  %p1698_p3 = scmp.lt.u32.totalorder %s214_s0, %s2612_s2 }
  0x5b   : > { %p1695_p0 = pnand %p1693_p2, %p1930_p4  ;;  %p1699_p5 = scmp.lt.u32.totalorder %s1697_s26, %s1692_s8 }
  0x5c   : > { %p1701_p10 = scmp.lt.u32.totalorder %s1692_s8, %s214_s0 }
  0x5d   : > { %p1696_p11 = pneg %p1695_p0  ;;  %p1700_p7 = por %p1699_p5, %p1698_p3 }
  0x5f   : > { %p1702_p12 = por %p1701_p10, %p1700_p7 }
  0x61   : > { %p1703_p1 = pnand %p1702_p12, %p1696_p11 }
  0x63   : > { %1706 = shalt.err (!%p1703_p1)
}
  0x64   : > { %s1707_s28 = scalar_lea.vmem %s217_s30, 256  ;;  %s1812_s9 = smov [#allocation7]  }
  0x65   : > { %p1708_p8 = scmp.ne.s32.totalorder %s217_s30, %s1707_s28  ;;  %s1712_s10 = sshll.u32 %s1812_s9, 4  ;;  %s1713_s10 = int_to_ptr.vmem [resolvable:$false] %s1712_s10 }
  0x66   : > { %s1714_s20 = scalar_lea.vmem %s1713_s10, 512  ;;  %p1715_p2 = scmp.lt.s32.totalorder %s217_s30, %s1713_s10 }
  0x67   : > { %p1710_p9 = pnand %p1708_p8, %p1930_p4  ;;  %p1716_p0 = scmp.lt.s32.totalorder %s1714_s20, %s1707_s28 }
  0x69   : > { %p1711_p6 = pneg %p1710_p9  ;;  %p1717_p13 = por %p1716_p0, %p1715_p2 }
  0x6b   : > { %p1718_p3 = pnand %p1717_p13, %p1711_p6 }
  0x6d   : > { %1721 = shalt.err (!%p1718_p3)
}
  0x6e   : > { %p2638_p5 = scmp.ne.s32.totalorder %s2629_s4, 0  ;;  %p2639_p11 = scmp.ne.s32.totalorder %s2634_s19, 0 }
  0x6f   : > { %s2010_s14 = sand.u32 (!%p2639_p11), 1, %s1792_s13   ;;  %p2640_p4 = scmp.ne.s32.totalorder (!%p2639_p11), %s2625_s24, 0 }
  0x70   : > { %1575 = dma.hbm_to_vmem [thread:$0]  (!%p2638_p5), %s214_s0, 256, %s217_s30, %s1924_s11  }
  0x71   : > { %225 = sbr.rel (%p2639_p11) target bundleno = 598 (0x256), region = 32  ;;  %s1478_s26 = sshll.u32 (!%p2639_p11), %s2010_s14, 2 }
  0x72   : > { %s228_s21 = scalar_lea.sflag (!%p2639_p11), [#allocation3], %s2010_s14  ;;  %s231_s22 = scalar_lea.vmem (!%p2639_p11), [#allocation2], %s1478_s26 }
  0x78   : > { %1775 = dma.done.wait (%p2640_p4), %s228_s21, 64  }
  0x79   : > { %1777 = vsyncadd (%p2640_p4), %s228_s21, 4294967232  ;;  %s236_s0 = sand.u32 1, %s1866_s18   ;;  %s1479_s4 = sshll.u32 %s2010_s14, 3 }
  0x7a   : > { %s237_s11 = scalar_lea.sflag [#allocation6], %s236_s0  ;;  %s2022_s19 = scalar_lea.vmem [#allocation5], %s1479_s4 }
  0x7b   : > { %1779 = dma.done.wait (%p2640_p4), %s237_s11, 384  }
  0x7c   : > { %1781 = vsyncadd (%p2640_p4), %s237_s11, 4294966912  ;;  %v285_v0 = vld [vmem:[%s231_s22] sm:$0xf]  ;;  %v328_v2 = vlaneseq  ;;  %v1813_v34 = vmov 0   ;;  %s1480_s18 = sshll.u32 %s2010_s14, 4  ;;  %s1491_s5 = sshll.u32 %s1800_s15, 7 }
  0x7d   : > { %v286_v1 = vadd.f32 1.0, %v285_v0  ;;  %s2328_s24 = scalar_lea.vmem [#allocation7], %s1480_s18  ;;  %s281_s30 = scalar_lea.vmem [#allocation8], %s1479_s4 }
  0x7e   : > { %v2028_v5 = vshrl.u32 %v328_v2, 7  ;;  %s1334_s6 = sshll.u32 %s281_s30, 4  ;;  %s2561_s23 = scalar_lea.hbm %s2613_s3, %s1491_s5  ;;  %s2563_s6 = int_to_ptr.vmem [resolvable:$true] %s1334_s6 }
  0x7f   : > { %v287_v3 = vmul.f32 16.0, %v286_v1  ;;  %s1318_s1 = scalar_lea.sflag [#allocation4], %s2010_s14  ;;  %s1722_s29 = scalar_lea.vmem %s2563_s6, 128 }
  0x80   : > { %v2031_v8 = vsub.s32 1, %v2028_v5  ;;  %v2034_v9 = vsub.s32 3, %v2028_v5  ;;  %v2037_v10 = vadd.s32 8, %v2028_v5  ;;  %v2040_v13 = vadd.s32 16, %v2028_v5  ;;  %p1723_p13 = scmp.ne.s32.totalorder %s2563_s6, %s1722_s29  ;;  %p2647_p7 = scmp.ne.s32.totalorder %s2626_s25, 0 }
  0x81   : > { %v1482_v4 = vadd.f32 -1.0, %v287_v3  ;;  %v2043_v14 = vadd.s32 24, %v2028_v5  ;;  %v2046_v15 = vadd.s32 32, %v2028_v5  ;;  %v2049_v16 = vadd.s32 40, %v2028_v5  ;;  %s1814_s15 = smov [#allocation8]  }
  0x82   : > { %v2052_v17 = vadd.s32 48, %v2028_v5  ;;  %v2055_v18 = vadd.s32 56, %v2028_v5  ;;  %v2058_v21 = vadd.s32 64, %v2028_v5  ;;  %v2061_v22 = vadd.s32 72, %v2028_v5  ;;  %p1724_p10 = pnand %p1723_p13, %p2647_p7  ;;  %s1726_s28 = sshll.u32 %s1814_s15, 4  ;;  %s1727_s28 = int_to_ptr.vmem [resolvable:$false] %s1726_s28 }
  0x83   : > { %v289_v6 = vmul.f32 0.5, %v1482_v4  ;;  %v2064_v24 = vadd.s32 80, %v2028_v5  ;;  %v2067_v25 = vadd.s32 88, %v2028_v5  ;;  %v2070_v26 = vadd.s32 96, %v2028_v5  ;;  %s1728_s9 = scalar_lea.vmem %s1727_s28, 256  ;;  %p1729_p1 = scmp.lt.s32.totalorder %s2563_s6, %s1727_s28 }
  0x84   : > { %v2077_v32 = vadd.s32 104, %v2028_v5  ;;  %v2080_v33 = vadd.s32 112, %v2028_v5  ;;  %v2085_v36 = vadd.s32 120, %v2028_v5  ;;  %v2092_v41 = vadd.s32 128, %v2028_v5  ;;  %p1725_p12 = pneg %p1724_p10  ;;  %p1730_p8 = scmp.lt.s32.totalorder %s1728_s9, %s1722_s29 }
  0x85   : > { %v290_v7 = vfloor.f32 %v289_v6  ;;  %v2097_v45 = vadd.s32 136, %v2028_v5  ;;  %v2110_v51 = vadd.s32 144, %v2028_v5  ;;  %v2113_v52 = vadd.s32 152, %v2028_v5 }
  0x86   : > { %v2116_v53 = vadd.s32 160, %v2028_v5  ;;  %v2126_v56 = vadd.s32 168, %v2028_v5  ;;  %p1731_p9 = por %p1730_p8, %p1729_p1 }
  0x87   : > { %v291_v11 = vsub.f32 %v289_v6, %v290_v7  ;;  %v1556_v12 = vtrunc.f32 %v290_v7 }
  0x88   : > { %p1732_p6 = pnand %p1731_p9, %p1725_p12 }
  0x89   : > { %v1557_v19 = vcvt.f32.s32 %v1556_v12  ;;  %v304_v20 = vsub.f32 1.0, %v291_v11  ;;  %v315_v23 = vrot.slane %v291_v11, 7 }
  0x8b   : > { %v293_v27 = vadd.s32 1, %v1557_v19  ;;  %vm294_vm0 = vcmp.ge.s32.totalorder %v1557_v19, 0  ;;  %vm295_vm1 = vcmp.lt.s32.totalorder %v1557_v19, 16  ;;  %v306_v28 = vrot.slane %v304_v20, 7 }
  0x8c   : > { %vm2072_vm2 = vmand %vm294_vm0, %vm295_vm1  ;;  %v325_v30 = vmul.u32 16, %v1557_v19  ;;  %v326_v31 = vrot.slane %v1557_v19, 7  ;;  %v317_v43 = vmul.f32 %v315_v23, %v304_v20  ;;  %v323_v50 = vmul.f32 %v315_v23, %v291_v11 }
  0x8d   : > { %vm297_vm3 = vcmp.ge.s32.totalorder %v293_v27, 0  ;;  %vm298_vm4 = vcmp.lt.s32.totalorder %v293_v27, 16  ;;  %v300_v35 = vsel %vm2072_vm2, 1, %v1813_v34  ;;  %v308_v39 = vmul.f32 %v306_v28, %v304_v20 }
  0x8e   : > { %vm2087_vm5 = vmand %vm297_vm3, %vm298_vm4  ;;  %v301_v38 = vrot.slane %v300_v35, 7  ;;  %v327_v40 = vadd.s32 %v326_v31, %v325_v30  ;;  %v320_v44 = vmul.f32 %v306_v28, %v291_v11 }
  0x8f   : > { %v310_v42 = vsel %vm2087_vm5, 1, %v1813_v34 }
  0x90   : > { %vm2099_vm6 = vcmp.ne.s32.totalorder %v301_v38, 0  ;;  %v311_v47 = vrot.slane %v310_v42, 7  ;;  %v364_v48 = vrot.slane %v327_v40, %v2031_v8  ;;  %v368_v49 = vrot.slane %v327_v40, %v2034_v9 }
  0x91   : > { %vm303_vm7 = vmand %vm2072_vm2, %vm2099_vm6 }
  0x92   : > { %v309_v54 = vsel %vm303_vm7, %v308_v39, 0.0  ;;  %vm312_vm8 = vcmp.ne.s32.totalorder %v311_v47, 0  ;;  %vm319_vm9 = vmand %vm2087_vm5, %vm2099_vm6  ;;  %v2123_v55 = vrot.slane %v368_v49, %v2031_v8  ;;  %v2131_v58 = vrot.slane %v364_v48, %v2031_v8 }
  0x93   : > { %vm313_vm10 = vmand %vm2072_vm2, %vm312_vm8  ;;  %v321_v57 = vsel %vm319_vm9, %v320_v44, 0.0  ;;  %v509_v59 = vrot.slane %v309_v54, %v2031_v8  ;;  %v513_v60 = vrot.slane %v309_v54, %v2034_v9 }
  0x94   : > { %v318_v61 = vsel %vm313_vm10, %v317_v43, 0.0  ;;  %vm322_vm11 = vmand %vm2087_vm5, %vm312_vm8  ;;  %v867_v62 = vrot.slane %v321_v57, %v2031_v8  ;;  %v871_v63 = vrot.slane %v321_v57, %v2034_v9  ;;  %v378_v0 = vsub.s32 %v2028_v5, %v2123_v55 }
  0x95   : > { %v324_v1 = vsel %vm322_vm11, %v323_v50, 0.0  ;;  %v2142_v2 = vrot.slane %v509_v59, %v2031_v8  ;;  %v2145_v3 = vrot.slane %v513_v60, %v2031_v8  ;;  %v656_v4 = vrot.slane %v318_v61, %v2031_v8 }
  0x96   : > { %v660_v6 = vrot.slane %v318_v61, %v2034_v9  ;;  %v2150_v7 = vrot.slane %v867_v62, %v2031_v8  ;;  %v2153_v11 = vrot.slane %v871_v63, %v2031_v8  ;;  %v1078_v12 = vrot.slane %v324_v1, %v2031_v8 }
  0x97   : > { %v2157_v19 = vrot.slane %v656_v4, %v2031_v8  ;;  %v1082_v20 = vrot.slane %v324_v1, %v2034_v9  ;;  %v380_v23 = vsub.s32 %v2037_v10, %v2123_v55  ;;  %vm442_vm12 = vcmp.eq.s32.totalorder %v378_v0, 0 }
  0x98   : > { %v2163_v27 = vrot.slane %v660_v6, %v2031_v8  ;;  %v2166_v28 = vrot.slane %v1078_v12, %v2031_v8  ;;  %v525_v29 = vsel %vm442_vm12, %v2145_v3, 0.0  ;;  %vm589_vm13 = vcmp.eq.s32.totalorder %v378_v0, 1 }
  0x99   : > { %v2170_v30 = vrot.slane %v1082_v20, %v2031_v8  ;;  %vm444_vm14 = vcmp.eq.s32.totalorder %v380_v23, 0  ;;  %vm591_vm15 = vcmp.eq.s32.totalorder %v380_v23, 1  ;;  %vm800_vm0 = vcmp.eq.s32.totalorder %v378_v0, 16 }
  0x9a   : > { %v527_v9 = vsel %vm444_vm14, %v2145_v3, 0.0  ;;  %v672_v31 = vsel %vm589_vm13, %v2163_v27, 0.0  ;;  %v674_v34 = vsel %vm591_vm15, %v2163_v27, 0.0  ;;  %vm802_vm1 = vcmp.eq.s32.totalorder %v380_v23, 16 }
  0x9b   : > { %v736_v35 = vadd.f32 %v672_v31, %v525_v29  ;;  %v738_v37 = vadd.f32 %v674_v34, %v527_v9  ;;  %v883_v38 = vsel %vm800_vm0, %v2153_v11, 0.0  ;;  %v885_v39 = vsel %vm802_vm1, %v2153_v11, 0.0 }
  0x9c   : > { %vm1011_vm2 = vcmp.eq.s32.totalorder %v378_v0, 17  ;;  %vm1013_vm3 = vcmp.eq.s32.totalorder %v380_v23, 17  ;;  %v377_v8 = vsub.s32 %v2028_v5, %v2131_v58  ;;  %v379_v40 = vsub.s32 %v2037_v10, %v2131_v58 }
  0x9d   : > { %v947_v42 = vadd.f32 %v883_v38, %v736_v35  ;;  %v949_v43 = vadd.f32 %v885_v39, %v738_v37  ;;  %v1094_v44 = vsel %vm1011_vm2, %v2170_v30, 0.0  ;;  %v1096_v46 = vsel %vm1013_vm3, %v2170_v30, 0.0 }
  0x9e   : > { %vm441_vm4 = vcmp.eq.s32.totalorder %v377_v8, 0  ;;  %vm443_vm5 = vcmp.eq.s32.totalorder %v379_v40, 0  ;;  %vm588_vm6 = vcmp.eq.s32.totalorder %v377_v8, 1  ;;  %vm590_vm7 = vcmp.eq.s32.totalorder %v379_v40, 1 }
  0x9f   : > { %v1158_v47 = vadd.f32 %v1094_v44, %v947_v42  ;;  %v1160_v48 = vadd.f32 %v1096_v46, %v949_v43  ;;  %v524_v49 = vsel %vm441_vm4, %v2142_v2, 0.0  ;;  %v526_v50 = vsel %vm443_vm5, %v2142_v2, 0.0 }
  0xa0   : > { %v671_v54 = vsel %vm588_vm6, %v2157_v19, 0.0  ;;  %v673_v10 = vsel %vm590_vm7, %v2157_v19, 0.0  ;;  %vm799_vm8 = vcmp.eq.s32.totalorder %v377_v8, 16  ;;  %vm801_vm9 = vcmp.eq.s32.totalorder %v379_v40, 16 }
  0xa1   : > { %v1492_v57 = vpack.c.bf16 %v1160_v48, %v1158_v47  ;;  %v735_v59 = vadd.f32 %v671_v54, %v524_v49  ;;  %v737_v60 = vadd.f32 %v673_v10, %v526_v50  ;;  %v882_v61 = vsel %vm799_vm8, %v2150_v7, 0.0 }
  0xa2   : > { %v884_v62 = vsel %vm801_vm9, %v2150_v7, 0.0  ;;  %vm1010_vm10 = vcmp.eq.s32.totalorder %v377_v8, 17  ;;  %vm1012_vm11 = vcmp.eq.s32.totalorder %v379_v40, 17  ;;  %v382_v63 = vsub.s32 %v2040_v13, %v2123_v55 }
  0xa3   : > { %1493 = vmatprep.subr.bf16.mxu0 %v1492_v57  ;;  %v946_v0 = vadd.f32 %v882_v61, %v735_v59  ;;  %v948_v1 = vadd.f32 %v884_v62, %v737_v60  ;;  %v1093_v4 = vsel %vm1010_vm10, %v2166_v28, 0.0  ;;  %v1095_v6 = vsel %vm1012_vm11, %v2166_v28, 0.0 }
  0xa4   : > { %v384_v12 = vsub.s32 %v2043_v14, %v2123_v55  ;;  %vm446_vm12 = vcmp.eq.s32.totalorder %v382_v63, 0  ;;  %vm593_vm13 = vcmp.eq.s32.totalorder %v382_v63, 1  ;;  %vm804_vm14 = vcmp.eq.s32.totalorder %v382_v63, 16 }
  0xa5   : > { %v1157_v20 = vadd.f32 %v1093_v4, %v946_v0  ;;  %v1159_v23 = vadd.f32 %v1095_v6, %v948_v1  ;;  %v529_v29 = vsel %vm446_vm12, %v2145_v3, 0.0  ;;  %v676_v9 = vsel %vm593_vm13, %v2163_v27, 0.0 }
  0xa6   : > { %vm448_vm15 = vcmp.eq.s32.totalorder %v384_v12, 0  ;;  %vm595_vm0 = vcmp.eq.s32.totalorder %v384_v12, 1  ;;  %v740_v31 = vadd.f32 %v676_v9, %v529_v29  ;;  %vm806_vm1 = vcmp.eq.s32.totalorder %v384_v12, 16 }
  0xa7   : > { %v1494_v34 = vpack.c.bf16 %v1159_v23, %v1157_v20  ;;  %v531_v35 = vsel %vm448_vm15, %v2145_v3, 0.0  ;;  %v678_v37 = vsel %vm595_vm0, %v2163_v27, 0.0  ;;  %v887_v38 = vsel %vm804_vm14, %v2153_v11, 0.0 }
  0xa8   : > { %v742_v39 = vadd.f32 %v678_v37, %v531_v35  ;;  %v889_v8 = vsel %vm806_vm1, %v2153_v11, 0.0  ;;  %v951_v40 = vadd.f32 %v887_v38, %v740_v31  ;;  %vm1015_vm2 = vcmp.eq.s32.totalorder %v382_v63, 17 }
  0xa9   : > { %1495 = vmatpush1.bf16.msra.mxu0 %v1494_v34  ;;  %vm1017_vm3 = vcmp.eq.s32.totalorder %v384_v12, 17  ;;  %v1098_v42 = vsel %vm1015_vm2, %v2170_v30, 0.0  ;;  %v381_v43 = vsub.s32 %v2040_v13, %v2131_v58  ;;  %v383_v44 = vsub.s32 %v2043_v14, %v2131_v58 }
  0xaa   : > { %v953_v46 = vadd.f32 %v889_v8, %v742_v39  ;;  %v1100_v47 = vsel %vm1017_vm3, %v2170_v30, 0.0  ;;  %v1162_v48 = vadd.f32 %v1098_v42, %v951_v40  ;;  %v386_v49 = vsub.s32 %v2046_v15, %v2123_v55 }
  0xab   : > { %vm445_vm4 = vcmp.eq.s32.totalorder %v381_v43, 0  ;;  %vm447_vm5 = vcmp.eq.s32.totalorder %v383_v44, 0  ;;  %vm592_vm6 = vcmp.eq.s32.totalorder %v381_v43, 1  ;;  %vm594_vm7 = vcmp.eq.s32.totalorder %v383_v44, 1 }
  0xac   : > { %v1164_v50 = vadd.f32 %v1100_v47, %v953_v46  ;;  %v528_v54 = vsel %vm445_vm4, %v2142_v2, 0.0  ;;  %v530_v10 = vsel %vm447_vm5, %v2142_v2, 0.0  ;;  %v675_v13 = vsel %vm592_vm6, %v2157_v19, 0.0 }
  0xad   : > { %v677_v14 = vsel %vm594_vm7, %v2157_v19, 0.0  ;;  %v739_v57 = vadd.f32 %v675_v13, %v528_v54  ;;  %vm803_vm8 = vcmp.eq.s32.totalorder %v381_v43, 16  ;;  %vm805_vm9 = vcmp.eq.s32.totalorder %v383_v44, 16 }
  0xae   : > { %v1496_v59 = vpack.c.bf16 %v1164_v50, %v1162_v48  ;;  %v741_v60 = vadd.f32 %v677_v14, %v530_v10  ;;  %v886_v61 = vsel %vm803_vm8, %v2150_v7, 0.0  ;;  %v888_v62 = vsel %vm805_vm9, %v2150_v7, 0.0 }
  0xaf   : > { %v950_v63 = vadd.f32 %v886_v61, %v739_v57  ;;  %vm1014_vm10 = vcmp.eq.s32.totalorder %v381_v43, 17  ;;  %vm1016_vm11 = vcmp.eq.s32.totalorder %v383_v44, 17  ;;  %v388_v0 = vsub.s32 %v2049_v16, %v2123_v55 }
  0xb0   : > { %1497 = vmatprep.subr.bf16.mxu0 %v1496_v59  ;;  %v952_v1 = vadd.f32 %v888_v62, %v741_v60  ;;  %v1097_v4 = vsel %vm1014_vm10, %v2166_v28, 0.0  ;;  %v1099_v6 = vsel %vm1016_vm11, %v2166_v28, 0.0  ;;  %vm450_vm12 = vcmp.eq.s32.totalorder %v386_v49, 0 }
  0xb1   : > { %v1161_v12 = vadd.f32 %v1097_v4, %v950_v63  ;;  %vm452_vm13 = vcmp.eq.s32.totalorder %v388_v0, 0  ;;  %v533_v20 = vsel %vm450_vm12, %v2145_v3, 0.0  ;;  %vm597_vm14 = vcmp.eq.s32.totalorder %v386_v49, 1 }
  0xb2   : > { %v1163_v23 = vadd.f32 %v1099_v6, %v952_v1  ;;  %v535_v29 = vsel %vm452_vm13, %v2145_v3, 0.0  ;;  %vm599_vm15 = vcmp.eq.s32.totalorder %v388_v0, 1  ;;  %v680_v9 = vsel %vm597_vm14, %v2163_v27, 0.0 }
  0xb3   : > { %v682_v31 = vsel %vm599_vm15, %v2163_v27, 0.0  ;;  %v744_v34 = vadd.f32 %v680_v9, %v533_v20  ;;  %vm808_vm0 = vcmp.eq.s32.totalorder %v386_v49, 16  ;;  %vm810_vm1 = vcmp.eq.s32.totalorder %v388_v0, 16 }
  0xb4   : > { %v1498_v35 = vpack.c.bf16 %v1163_v23, %v1161_v12  ;;  %v746_v37 = vadd.f32 %v682_v31, %v535_v29  ;;  %v891_v38 = vsel %vm808_vm0, %v2153_v11, 0.0  ;;  %v893_v39 = vsel %vm810_vm1, %v2153_v11, 0.0 }
  0xb5   : > { %v955_v8 = vadd.f32 %v891_v38, %v744_v34  ;;  %vm1019_vm2 = vcmp.eq.s32.totalorder %v386_v49, 17  ;;  %vm1021_vm3 = vcmp.eq.s32.totalorder %v388_v0, 17  ;;  %v385_v40 = vsub.s32 %v2046_v15, %v2131_v58 }
  0xb6   : > { %1499 = vmatpush1.bf16.msra.mxu0 %v1498_v35  ;;  %v957_v42 = vadd.f32 %v893_v39, %v746_v37  ;;  %v1102_v43 = vsel %vm1019_vm2, %v2170_v30, 0.0  ;;  %v1104_v44 = vsel %vm1021_vm3, %v2170_v30, 0.0  ;;  %v387_v46 = vsub.s32 %v2049_v16, %v2131_v58 }
  0xb7   : > { %v1166_v47 = vadd.f32 %v1102_v43, %v955_v8  ;;  %vm449_vm4 = vcmp.eq.s32.totalorder %v385_v40, 0  ;;  %vm596_vm5 = vcmp.eq.s32.totalorder %v385_v40, 1  ;;  %vm807_vm6 = vcmp.eq.s32.totalorder %v385_v40, 16 }
  0xb8   : > { %v1168_v48 = vadd.f32 %v1104_v44, %v957_v42  ;;  %vm451_vm7 = vcmp.eq.s32.totalorder %v387_v46, 0  ;;  %v532_v49 = vsel %vm449_vm4, %v2142_v2, 0.0  ;;  %vm598_vm8 = vcmp.eq.s32.totalorder %v387_v46, 1 }
  0xb9   : > { %v534_v15 = vsel %vm451_vm7, %v2142_v2, 0.0  ;;  %v679_v50 = vsel %vm596_vm5, %v2157_v19, 0.0  ;;  %v681_v54 = vsel %vm598_vm8, %v2157_v19, 0.0  ;;  %vm809_vm9 = vcmp.eq.s32.totalorder %v387_v46, 16 }
  0xba   : > { %v1500_v10 = vpack.c.bf16 %v1168_v48, %v1166_v47  ;;  %v743_v13 = vadd.f32 %v679_v50, %v532_v49  ;;  %v745_v14 = vadd.f32 %v681_v54, %v534_v15  ;;  %v890_v16 = vsel %vm807_vm6, %v2150_v7, 0.0 }
  0xbb   : > { %v892_v57 = vsel %vm809_vm9, %v2150_v7, 0.0  ;;  %vm1018_vm10 = vcmp.eq.s32.totalorder %v385_v40, 17  ;;  %vm1020_vm11 = vcmp.eq.s32.totalorder %v387_v46, 17  ;;  %v390_v59 = vsub.s32 %v2052_v17, %v2123_v55 }
  0xbc   : > { %1501 = vmatprep.subr.bf16.mxu0 %v1500_v10  ;;  %v954_v60 = vadd.f32 %v890_v16, %v743_v13  ;;  %v956_v61 = vadd.f32 %v892_v57, %v745_v14  ;;  %v1101_v62 = vsel %vm1018_vm10, %v2166_v28, 0.0  ;;  %v1103_v63 = vsel %vm1020_vm11, %v2166_v28, 0.0 }
  0xbd   : > { %v392_v0 = vsub.s32 %v2055_v18, %v2123_v55  ;;  %vm454_vm12 = vcmp.eq.s32.totalorder %v390_v59, 0  ;;  %vm601_vm13 = vcmp.eq.s32.totalorder %v390_v59, 1  ;;  %vm812_vm14 = vcmp.eq.s32.totalorder %v390_v59, 16 }
  0xbe   : > { %v1165_v1 = vadd.f32 %v1101_v62, %v954_v60  ;;  %v1167_v4 = vadd.f32 %v1103_v63, %v956_v61  ;;  %v537_v6 = vsel %vm454_vm12, %v2145_v3, 0.0  ;;  %v684_v12 = vsel %vm601_vm13, %v2163_v27, 0.0 }
  0xbf   : > { %vm456_vm15 = vcmp.eq.s32.totalorder %v392_v0, 0  ;;  %vm603_vm0 = vcmp.eq.s32.totalorder %v392_v0, 1  ;;  %v748_v20 = vadd.f32 %v684_v12, %v537_v6  ;;  %vm814_vm1 = vcmp.eq.s32.totalorder %v392_v0, 16 }
  0xc0   : > { %v1502_v23 = vpack.c.bf16 %v1167_v4, %v1165_v1  ;;  %v539_v29 = vsel %vm456_vm15, %v2145_v3, 0.0  ;;  %v686_v9 = vsel %vm603_vm0, %v2163_v27, 0.0  ;;  %v895_v31 = vsel %vm812_vm14, %v2153_v11, 0.0 }
  0xc1   : > { %v750_v34 = vadd.f32 %v686_v9, %v539_v29  ;;  %v897_v35 = vsel %vm814_vm1, %v2153_v11, 0.0  ;;  %v959_v37 = vadd.f32 %v895_v31, %v748_v20  ;;  %vm1023_vm2 = vcmp.eq.s32.totalorder %v390_v59, 17 }
  0xc2   : > { %1503 = vmatpush1.bf16.msra.mxu0 %v1502_v23  ;;  %vm1025_vm3 = vcmp.eq.s32.totalorder %v392_v0, 17  ;;  %v1106_v38 = vsel %vm1023_vm2, %v2170_v30, 0.0  ;;  %v389_v39 = vsub.s32 %v2052_v17, %v2131_v58  ;;  %v391_v8 = vsub.s32 %v2055_v18, %v2131_v58 }
  0xc3   : > { %v961_v40 = vadd.f32 %v897_v35, %v750_v34  ;;  %v1108_v42 = vsel %vm1025_vm3, %v2170_v30, 0.0  ;;  %v1170_v43 = vadd.f32 %v1106_v38, %v959_v37  ;;  %v394_v44 = vsub.s32 %v2058_v21, %v2123_v55 }
  0xc4   : > { %vm453_vm4 = vcmp.eq.s32.totalorder %v389_v39, 0  ;;  %vm455_vm5 = vcmp.eq.s32.totalorder %v391_v8, 0  ;;  %vm600_vm6 = vcmp.eq.s32.totalorder %v389_v39, 1  ;;  %vm602_vm7 = vcmp.eq.s32.totalorder %v391_v8, 1 }
  0xc5   : > { %v1172_v46 = vadd.f32 %v1108_v42, %v961_v40  ;;  %v536_v47 = vsel %vm453_vm4, %v2142_v2, 0.0  ;;  %v538_v48 = vsel %vm455_vm5, %v2142_v2, 0.0  ;;  %v683_v17 = vsel %vm600_vm6, %v2157_v19, 0.0 }
  0xc6   : > { %v685_v18 = vsel %vm602_vm7, %v2157_v19, 0.0  ;;  %v747_v49 = vadd.f32 %v683_v17, %v536_v47  ;;  %vm811_vm8 = vcmp.eq.s32.totalorder %v389_v39, 16  ;;  %vm813_vm9 = vcmp.eq.s32.totalorder %v391_v8, 16 }
  0xc7   : > { %v1504_v15 = vpack.c.bf16 %v1172_v46, %v1170_v43  ;;  %v749_v50 = vadd.f32 %v685_v18, %v538_v48  ;;  %v894_v54 = vsel %vm811_vm8, %v2150_v7, 0.0  ;;  %v896_v10 = vsel %vm813_vm9, %v2150_v7, 0.0 }
  0xc8   : > { %v958_v13 = vadd.f32 %v894_v54, %v747_v49  ;;  %vm1022_vm10 = vcmp.eq.s32.totalorder %v389_v39, 17  ;;  %vm1024_vm11 = vcmp.eq.s32.totalorder %v391_v8, 17  ;;  %v396_v14 = vsub.s32 %v2061_v22, %v2123_v55 }
  0xc9   : > { %1505 = vmatprep.subr.bf16.mxu0 %v1504_v15  ;;  %v960_v16 = vadd.f32 %v896_v10, %v749_v50  ;;  %v1105_v57 = vsel %vm1022_vm10, %v2166_v28, 0.0  ;;  %v1107_v59 = vsel %vm1024_vm11, %v2166_v28, 0.0  ;;  %vm458_vm12 = vcmp.eq.s32.totalorder %v394_v44, 0 }
  0xca   : > { %v1169_v60 = vadd.f32 %v1105_v57, %v958_v13  ;;  %vm460_vm13 = vcmp.eq.s32.totalorder %v396_v14, 0  ;;  %v541_v61 = vsel %vm458_vm12, %v2145_v3, 0.0  ;;  %vm605_vm14 = vcmp.eq.s32.totalorder %v394_v44, 1 }
  0xcb   : > { %v1171_v62 = vadd.f32 %v1107_v59, %v960_v16  ;;  %v543_v63 = vsel %vm460_vm13, %v2145_v3, 0.0  ;;  %vm607_vm15 = vcmp.eq.s32.totalorder %v396_v14, 1  ;;  %v688_v0 = vsel %vm605_vm14, %v2163_v27, 0.0 }
  0xcc   : > { %v690_v1 = vsel %vm607_vm15, %v2163_v27, 0.0  ;;  %v752_v4 = vadd.f32 %v688_v0, %v541_v61  ;;  %vm816_vm0 = vcmp.eq.s32.totalorder %v394_v44, 16  ;;  %vm818_vm1 = vcmp.eq.s32.totalorder %v396_v14, 16 }
  0xcd   : > { %v1506_v6 = vpack.c.bf16 %v1171_v62, %v1169_v60  ;;  %v754_v12 = vadd.f32 %v690_v1, %v543_v63  ;;  %v899_v20 = vsel %vm816_vm0, %v2153_v11, 0.0  ;;  %v901_v23 = vsel %vm818_vm1, %v2153_v11, 0.0 }
  0xce   : > { %v963_v29 = vadd.f32 %v899_v20, %v752_v4  ;;  %vm1027_vm2 = vcmp.eq.s32.totalorder %v394_v44, 17  ;;  %vm1029_vm3 = vcmp.eq.s32.totalorder %v396_v14, 17  ;;  %v393_v9 = vsub.s32 %v2058_v21, %v2131_v58 }
  0xcf   : > { %1507 = vmatpush1.bf16.msra.mxu0 %v1506_v6  ;;  %v965_v31 = vadd.f32 %v901_v23, %v754_v12  ;;  %v1110_v34 = vsel %vm1027_vm2, %v2170_v30, 0.0  ;;  %v1112_v35 = vsel %vm1029_vm3, %v2170_v30, 0.0  ;;  %v395_v37 = vsub.s32 %v2061_v22, %v2131_v58 }
  0xd0   : > { %v1174_v38 = vadd.f32 %v1110_v34, %v963_v29  ;;  %vm457_vm4 = vcmp.eq.s32.totalorder %v393_v9, 0  ;;  %vm604_vm5 = vcmp.eq.s32.totalorder %v393_v9, 1  ;;  %vm815_vm6 = vcmp.eq.s32.totalorder %v393_v9, 16 }
  0xd1   : > { %v1176_v39 = vadd.f32 %v1112_v35, %v965_v31  ;;  %vm459_vm7 = vcmp.eq.s32.totalorder %v395_v37, 0  ;;  %v540_v8 = vsel %vm457_vm4, %v2142_v2, 0.0  ;;  %vm606_vm8 = vcmp.eq.s32.totalorder %v395_v37, 1 }
  0xd2   : > { %v542_v21 = vsel %vm459_vm7, %v2142_v2, 0.0  ;;  %v687_v40 = vsel %vm604_vm5, %v2157_v19, 0.0  ;;  %v689_v42 = vsel %vm606_vm8, %v2157_v19, 0.0  ;;  %vm817_vm9 = vcmp.eq.s32.totalorder %v395_v37, 16 }
  0xd3   : > { %v1508_v43 = vpack.c.bf16 %v1176_v39, %v1174_v38  ;;  %v751_v44 = vadd.f32 %v687_v40, %v540_v8  ;;  %v753_v46 = vadd.f32 %v689_v42, %v542_v21  ;;  %v898_v22 = vsel %vm815_vm6, %v2150_v7, 0.0 }
  0xd4   : > { %v900_v47 = vsel %vm817_vm9, %v2150_v7, 0.0  ;;  %vm1026_vm10 = vcmp.eq.s32.totalorder %v393_v9, 17  ;;  %vm1028_vm11 = vcmp.eq.s32.totalorder %v395_v37, 17  ;;  %v398_v48 = vsub.s32 %v2064_v24, %v2123_v55 }
  0xd5   : > { %1509 = vmatprep.subr.bf16.mxu0 %v1508_v43  ;;  %v962_v17 = vadd.f32 %v898_v22, %v751_v44  ;;  %v964_v18 = vadd.f32 %v900_v47, %v753_v46  ;;  %v1109_v49 = vsel %vm1026_vm10, %v2166_v28, 0.0  ;;  %v1111_v15 = vsel %vm1028_vm11, %v2166_v28, 0.0 }
  0xd6   : > { %v400_v50 = vsub.s32 %v2067_v25, %v2123_v55  ;;  %vm462_vm12 = vcmp.eq.s32.totalorder %v398_v48, 0  ;;  %vm609_vm13 = vcmp.eq.s32.totalorder %v398_v48, 1  ;;  %vm820_vm14 = vcmp.eq.s32.totalorder %v398_v48, 16 }
  0xd7   : > { %v1173_v54 = vadd.f32 %v1109_v49, %v962_v17  ;;  %v1175_v10 = vadd.f32 %v1111_v15, %v964_v18  ;;  %v545_v13 = vsel %vm462_vm12, %v2145_v3, 0.0  ;;  %v692_v14 = vsel %vm609_vm13, %v2163_v27, 0.0 }
  0xd8   : > { %vm464_vm15 = vcmp.eq.s32.totalorder %v400_v50, 0  ;;  %vm611_vm0 = vcmp.eq.s32.totalorder %v400_v50, 1  ;;  %v756_v16 = vadd.f32 %v692_v14, %v545_v13  ;;  %vm822_vm1 = vcmp.eq.s32.totalorder %v400_v50, 16 }
  0xd9   : > { %v1510_v57 = vpack.c.bf16 %v1175_v10, %v1173_v54  ;;  %v547_v59 = vsel %vm464_vm15, %v2145_v3, 0.0  ;;  %v694_v60 = vsel %vm611_vm0, %v2163_v27, 0.0  ;;  %v903_v61 = vsel %vm820_vm14, %v2153_v11, 0.0 }
  0xda   : > { %v758_v62 = vadd.f32 %v694_v60, %v547_v59  ;;  %v905_v63 = vsel %vm822_vm1, %v2153_v11, 0.0  ;;  %v967_v0 = vadd.f32 %v903_v61, %v756_v16  ;;  %vm1031_vm2 = vcmp.eq.s32.totalorder %v398_v48, 17 }
  0xdb   : > { %1511 = vmatpush1.bf16.msra.mxu0 %v1510_v57  ;;  %vm1033_vm3 = vcmp.eq.s32.totalorder %v400_v50, 17  ;;  %v1114_v1 = vsel %vm1031_vm2, %v2170_v30, 0.0  ;;  %v397_v4 = vsub.s32 %v2064_v24, %v2131_v58  ;;  %v399_v6 = vsub.s32 %v2067_v25, %v2131_v58 }
  0xdc   : > { %v969_v12 = vadd.f32 %v905_v63, %v758_v62  ;;  %v1116_v20 = vsel %vm1033_vm3, %v2170_v30, 0.0  ;;  %v1178_v23 = vadd.f32 %v1114_v1, %v967_v0  ;;  %v402_v29 = vsub.s32 %v2070_v26, %v2123_v55  ;;  %v1222_v62 = vld [vmem:[%s2328_s24 + $0x8] sm:$0xff] }
  0xdd   : > { %vm461_vm4 = vcmp.eq.s32.totalorder %v397_v4, 0  ;;  %vm463_vm5 = vcmp.eq.s32.totalorder %v399_v6, 0  ;;  %vm608_vm6 = vcmp.eq.s32.totalorder %v397_v4, 1  ;;  %vm610_vm7 = vcmp.eq.s32.totalorder %v399_v6, 1  ;;  %1287 = vmatprep.mubr.f32.mxu0 %v1222_v62 }
  0xde   : > { %v1180_v9 = vadd.f32 %v1116_v20, %v969_v12  ;;  %v544_v31 = vsel %vm461_vm4, %v2142_v2, 0.0  ;;  %v546_v34 = vsel %vm463_vm5, %v2142_v2, 0.0  ;;  %v691_v24 = vsel %vm608_vm6, %v2157_v19, 0.0 }
  0xdf   : > { %v693_v25 = vsel %vm610_vm7, %v2157_v19, 0.0  ;;  %v755_v35 = vadd.f32 %v691_v24, %v544_v31  ;;  %vm819_vm8 = vcmp.eq.s32.totalorder %v397_v4, 16  ;;  %vm821_vm9 = vcmp.eq.s32.totalorder %v399_v6, 16 }
  0xe0   : > { %v1512_v37 = vpack.c.bf16 %v1180_v9, %v1178_v23  ;;  %v757_v38 = vadd.f32 %v693_v25, %v546_v34  ;;  %v902_v39 = vsel %vm819_vm8, %v2150_v7, 0.0  ;;  %v904_v8 = vsel %vm821_vm9, %v2150_v7, 0.0 }
  0xe1   : > { %v966_v21 = vadd.f32 %v902_v39, %v755_v35  ;;  %vm1030_vm10 = vcmp.eq.s32.totalorder %v397_v4, 17  ;;  %vm1032_vm11 = vcmp.eq.s32.totalorder %v399_v6, 17  ;;  %v404_v40 = vsub.s32 %v2077_v32, %v2123_v55 }
  0xe2   : > { %1513 = vmatprep.subr.bf16.mxu0 %v1512_v37  ;;  %v968_v42 = vadd.f32 %v904_v8, %v757_v38  ;;  %v1113_v43 = vsel %vm1030_vm10, %v2166_v28, 0.0  ;;  %v1115_v44 = vsel %vm1032_vm11, %v2166_v28, 0.0  ;;  %vm466_vm12 = vcmp.eq.s32.totalorder %v402_v29, 0 }
  0xe3   : > { %v1177_v46 = vadd.f32 %v1113_v43, %v966_v21  ;;  %vm468_vm13 = vcmp.eq.s32.totalorder %v404_v40, 0  ;;  %v549_v22 = vsel %vm466_vm12, %v2145_v3, 0.0  ;;  %vm613_vm14 = vcmp.eq.s32.totalorder %v402_v29, 1 }
  0xe4   : > { %v1179_v47 = vadd.f32 %v1115_v44, %v968_v42  ;;  %v551_v48 = vsel %vm468_vm13, %v2145_v3, 0.0  ;;  %vm615_vm15 = vcmp.eq.s32.totalorder %v404_v40, 1  ;;  %v696_v17 = vsel %vm613_vm14, %v2163_v27, 0.0 }
  0xe5   : > { %v698_v18 = vsel %vm615_vm15, %v2163_v27, 0.0  ;;  %v760_v49 = vadd.f32 %v696_v17, %v549_v22  ;;  %vm824_vm0 = vcmp.eq.s32.totalorder %v402_v29, 16  ;;  %vm826_vm1 = vcmp.eq.s32.totalorder %v404_v40, 16 }
  0xe6   : > { %v1514_v15 = vpack.c.bf16 %v1179_v47, %v1177_v46  ;;  %v762_v50 = vadd.f32 %v698_v18, %v551_v48  ;;  %v907_v54 = vsel %vm824_vm0, %v2153_v11, 0.0  ;;  %v909_v10 = vsel %vm826_vm1, %v2153_v11, 0.0 }
  0xe7   : > { %v971_v13 = vadd.f32 %v907_v54, %v760_v49  ;;  %vm1035_vm2 = vcmp.eq.s32.totalorder %v402_v29, 17  ;;  %vm1037_vm3 = vcmp.eq.s32.totalorder %v404_v40, 17  ;;  %v401_v14 = vsub.s32 %v2070_v26, %v2131_v58 }
  0xe8   : > { %1515 = vmatpush1.bf16.msra.mxu0 %v1514_v15  ;;  %v973_v16 = vadd.f32 %v909_v10, %v762_v50  ;;  %v1118_v57 = vsel %vm1035_vm2, %v2170_v30, 0.0  ;;  %v1120_v59 = vsel %vm1037_vm3, %v2170_v30, 0.0  ;;  %v403_v60 = vsub.s32 %v2077_v32, %v2131_v58 }
  0xe9   : > { %v1182_v61 = vadd.f32 %v1118_v57, %v971_v13  ;;  %vm465_vm4 = vcmp.eq.s32.totalorder %v401_v14, 0  ;;  %vm612_vm5 = vcmp.eq.s32.totalorder %v401_v14, 1  ;;  %vm823_vm6 = vcmp.eq.s32.totalorder %v401_v14, 16 }
  0xea   : > { %v1184_v63 = vadd.f32 %v1120_v59, %v973_v16  ;;  %vm467_vm7 = vcmp.eq.s32.totalorder %v403_v60, 0  ;;  %v548_v26 = vsel %vm465_vm4, %v2142_v2, 0.0  ;;  %vm614_vm8 = vcmp.eq.s32.totalorder %v403_v60, 1 }
  0xeb   : > { %v550_v0 = vsel %vm467_vm7, %v2142_v2, 0.0  ;;  %v695_v1 = vsel %vm612_vm5, %v2157_v19, 0.0  ;;  %v697_v32 = vsel %vm614_vm8, %v2157_v19, 0.0  ;;  %vm825_vm9 = vcmp.eq.s32.totalorder %v403_v60, 16 }
  0xec   : > { %v1516_v4 = vpack.c.bf16 %v1184_v63, %v1182_v61  ;;  %v759_v6 = vadd.f32 %v695_v1, %v548_v26  ;;  %v761_v12 = vadd.f32 %v697_v32, %v550_v0  ;;  %v906_v20 = vsel %vm823_vm6, %v2150_v7, 0.0 }
  0xed   : > { %v908_v23 = vsel %vm825_vm9, %v2150_v7, 0.0  ;;  %vm1034_vm10 = vcmp.eq.s32.totalorder %v401_v14, 17  ;;  %vm1036_vm11 = vcmp.eq.s32.totalorder %v403_v60, 17  ;;  %v406_v29 = vsub.s32 %v2080_v33, %v2123_v55 }
  0xee   : > { %1517 = vmatprep.subr.bf16.mxu0 %v1516_v4  ;;  %v970_v9 = vadd.f32 %v906_v20, %v759_v6  ;;  %v972_v31 = vadd.f32 %v908_v23, %v761_v12  ;;  %v1117_v34 = vsel %vm1034_vm10, %v2166_v28, 0.0  ;;  %v1119_v24 = vsel %vm1036_vm11, %v2166_v28, 0.0 }
  0xef   : > { %v408_v25 = vsub.s32 %v2085_v36, %v2123_v55  ;;  %vm470_vm12 = vcmp.eq.s32.totalorder %v406_v29, 0  ;;  %vm617_vm13 = vcmp.eq.s32.totalorder %v406_v29, 1  ;;  %vm828_vm14 = vcmp.eq.s32.totalorder %v406_v29, 16 }
  0xf0   : > { %v1181_v35 = vadd.f32 %v1117_v34, %v970_v9  ;;  %v1183_v37 = vadd.f32 %v1119_v24, %v972_v31  ;;  %v553_v38 = vsel %vm470_vm12, %v2145_v3, 0.0  ;;  %v700_v39 = vsel %vm617_vm13, %v2163_v27, 0.0 }
  0xf1   : > { %vm472_vm15 = vcmp.eq.s32.totalorder %v408_v25, 0  ;;  %vm619_vm0 = vcmp.eq.s32.totalorder %v408_v25, 1  ;;  %v764_v8 = vadd.f32 %v700_v39, %v553_v38  ;;  %vm830_vm1 = vcmp.eq.s32.totalorder %v408_v25, 16 }
  0xf2   : > { %v1518_v21 = vpack.c.bf16 %v1183_v37, %v1181_v35  ;;  %v555_v40 = vsel %vm472_vm15, %v2145_v3, 0.0  ;;  %v702_v42 = vsel %vm619_vm0, %v2163_v27, 0.0  ;;  %v911_v43 = vsel %vm828_vm14, %v2153_v11, 0.0 }
  0xf3   : > { %v766_v44 = vadd.f32 %v702_v42, %v555_v40  ;;  %v913_v46 = vsel %vm830_vm1, %v2153_v11, 0.0  ;;  %v975_v22 = vadd.f32 %v911_v43, %v764_v8  ;;  %vm1039_vm2 = vcmp.eq.s32.totalorder %v406_v29, 17 }
  0xf4   : > { %1519 = vmatpush1.bf16.msra.mxu0 %v1518_v21  ;;  %vm1041_vm3 = vcmp.eq.s32.totalorder %v408_v25, 17  ;;  %v1122_v47 = vsel %vm1039_vm2, %v2170_v30, 0.0  ;;  %v405_v48 = vsub.s32 %v2080_v33, %v2131_v58  ;;  %v407_v17 = vsub.s32 %v2085_v36, %v2131_v58 }
  0xf5   : > { %v977_v18 = vadd.f32 %v913_v46, %v766_v44  ;;  %v1124_v49 = vsel %vm1041_vm3, %v2170_v30, 0.0  ;;  %v1186_v15 = vadd.f32 %v1122_v47, %v975_v22  ;;  %v410_v50 = vsub.s32 %v2092_v41, %v2123_v55 }
  0xf6   : > { %vm469_vm4 = vcmp.eq.s32.totalorder %v405_v48, 0  ;;  %vm471_vm5 = vcmp.eq.s32.totalorder %v407_v17, 0  ;;  %vm616_vm6 = vcmp.eq.s32.totalorder %v405_v48, 1  ;;  %vm618_vm7 = vcmp.eq.s32.totalorder %v407_v17, 1 }
  0xf7   : > { %v1188_v54 = vadd.f32 %v1124_v49, %v977_v18  ;;  %v552_v10 = vsel %vm469_vm4, %v2142_v2, 0.0  ;;  %v554_v13 = vsel %vm471_vm5, %v2142_v2, 0.0  ;;  %v699_v33 = vsel %vm616_vm6, %v2157_v19, 0.0 }
  0xf8   : > { %v701_v36 = vsel %vm618_vm7, %v2157_v19, 0.0  ;;  %v763_v14 = vadd.f32 %v699_v33, %v552_v10  ;;  %vm827_vm8 = vcmp.eq.s32.totalorder %v405_v48, 16  ;;  %vm829_vm9 = vcmp.eq.s32.totalorder %v407_v17, 16 }
  0xf9   : > { %v1520_v16 = vpack.c.bf16 %v1188_v54, %v1186_v15  ;;  %v765_v57 = vadd.f32 %v701_v36, %v554_v13  ;;  %v910_v59 = vsel %vm827_vm8, %v2150_v7, 0.0  ;;  %v912_v60 = vsel %vm829_vm9, %v2150_v7, 0.0 }
  0xfa   : > { %v974_v61 = vadd.f32 %v910_v59, %v763_v14  ;;  %vm1038_vm10 = vcmp.eq.s32.totalorder %v405_v48, 17  ;;  %vm1040_vm11 = vcmp.eq.s32.totalorder %v407_v17, 17  ;;  %v412_v62 = vsub.s32 %v2097_v45, %v2123_v55 }
  0xfb   : > { %1521 = vmatprep.subr.bf16.mxu0 %v1520_v16  ;;  %v976_v63 = vadd.f32 %v912_v60, %v765_v57  ;;  %v1121_v26 = vsel %vm1038_vm10, %v2166_v28, 0.0  ;;  %v1123_v0 = vsel %vm1040_vm11, %v2166_v28, 0.0  ;;  %vm474_vm12 = vcmp.eq.s32.totalorder %v410_v50, 0 }
  0xfc   : > { %v1185_v1 = vadd.f32 %v1121_v26, %v974_v61  ;;  %vm476_vm13 = vcmp.eq.s32.totalorder %v412_v62, 0  ;;  %v557_v32 = vsel %vm474_vm12, %v2145_v3, 0.0  ;;  %vm621_vm14 = vcmp.eq.s32.totalorder %v410_v50, 1 }
  0xfd   : > { %v1187_v4 = vadd.f32 %v1123_v0, %v976_v63  ;;  %v559_v6 = vsel %vm476_vm13, %v2145_v3, 0.0  ;;  %vm623_vm15 = vcmp.eq.s32.totalorder %v412_v62, 1  ;;  %v704_v12 = vsel %vm621_vm14, %v2163_v27, 0.0 }
  0xfe   : > { %v706_v20 = vsel %vm623_vm15, %v2163_v27, 0.0  ;;  %v768_v23 = vadd.f32 %v704_v12, %v557_v32  ;;  %vm832_vm0 = vcmp.eq.s32.totalorder %v410_v50, 16  ;;  %vm834_vm1 = vcmp.eq.s32.totalorder %v412_v62, 16 }
  0xff   : > { %v1522_v29 = vpack.c.bf16 %v1187_v4, %v1185_v1  ;;  %v770_v9 = vadd.f32 %v706_v20, %v559_v6  ;;  %v915_v31 = vsel %vm832_vm0, %v2153_v11, 0.0  ;;  %v917_v34 = vsel %vm834_vm1, %v2153_v11, 0.0 }
 0x100   : > { %v979_v24 = vadd.f32 %v915_v31, %v768_v23  ;;  %vm1043_vm2 = vcmp.eq.s32.totalorder %v410_v50, 17  ;;  %vm1045_vm3 = vcmp.eq.s32.totalorder %v412_v62, 17  ;;  %v409_v25 = vsub.s32 %v2092_v41, %v2131_v58 }
 0x101   : > { %1523 = vmatpush1.bf16.msra.mxu0 %v1522_v29  ;;  %v981_v35 = vadd.f32 %v917_v34, %v770_v9  ;;  %v1126_v37 = vsel %vm1043_vm2, %v2170_v30, 0.0  ;;  %v1128_v38 = vsel %vm1045_vm3, %v2170_v30, 0.0  ;;  %v411_v39 = vsub.s32 %v2097_v45, %v2131_v58 }
 0x102   : > { %v1190_v8 = vadd.f32 %v1126_v37, %v979_v24  ;;  %vm473_vm4 = vcmp.eq.s32.totalorder %v409_v25, 0  ;;  %vm620_vm5 = vcmp.eq.s32.totalorder %v409_v25, 1  ;;  %vm831_vm6 = vcmp.eq.s32.totalorder %v409_v25, 16 }
 0x103   : > { %v1192_v21 = vadd.f32 %v1128_v38, %v981_v35  ;;  %vm475_vm7 = vcmp.eq.s32.totalorder %v411_v39, 0  ;;  %v556_v40 = vsel %vm473_vm4, %v2142_v2, 0.0  ;;  %vm622_vm8 = vcmp.eq.s32.totalorder %v411_v39, 1 }
 0x104   : > { %v558_v41 = vsel %vm475_vm7, %v2142_v2, 0.0  ;;  %v703_v42 = vsel %vm620_vm5, %v2157_v19, 0.0  ;;  %v705_v43 = vsel %vm622_vm8, %v2157_v19, 0.0  ;;  %vm833_vm9 = vcmp.eq.s32.totalorder %v411_v39, 16 }
 0x105   : > { %v1524_v44 = vpack.c.bf16 %v1192_v21, %v1190_v8  ;;  %v767_v46 = vadd.f32 %v703_v42, %v556_v40  ;;  %v769_v22 = vadd.f32 %v705_v43, %v558_v41  ;;  %v914_v45 = vsel %vm831_vm6, %v2150_v7, 0.0 }
 0x106   : > { %v916_v47 = vsel %vm833_vm9, %v2150_v7, 0.0  ;;  %vm1042_vm10 = vcmp.eq.s32.totalorder %v409_v25, 17  ;;  %vm1044_vm11 = vcmp.eq.s32.totalorder %v411_v39, 17  ;;  %v414_v48 = vsub.s32 %v2110_v51, %v2123_v55 }
 0x107   : > { %1525 = vmatprep.subr.bf16.mxu0 %v1524_v44  ;;  %v978_v17 = vadd.f32 %v914_v45, %v767_v46  ;;  %v980_v18 = vadd.f32 %v916_v47, %v769_v22  ;;  %v1125_v49 = vsel %vm1042_vm10, %v2166_v28, 0.0  ;;  %v1127_v15 = vsel %vm1044_vm11, %v2166_v28, 0.0 }
 0x108   : > { %v416_v50 = vsub.s32 %v2113_v52, %v2123_v55  ;;  %vm478_vm12 = vcmp.eq.s32.totalorder %v414_v48, 0  ;;  %vm625_vm13 = vcmp.eq.s32.totalorder %v414_v48, 1  ;;  %vm836_vm14 = vcmp.eq.s32.totalorder %v414_v48, 16 }
 0x109   : > { %v1189_v54 = vadd.f32 %v1125_v49, %v978_v17  ;;  %v1191_v10 = vadd.f32 %v1127_v15, %v980_v18  ;;  %v561_v13 = vsel %vm478_vm12, %v2145_v3, 0.0  ;;  %v708_v33 = vsel %vm625_vm13, %v2163_v27, 0.0 }
 0x10a   : > { %vm480_vm15 = vcmp.eq.s32.totalorder %v416_v50, 0  ;;  %vm627_vm0 = vcmp.eq.s32.totalorder %v416_v50, 1  ;;  %v772_v36 = vadd.f32 %v708_v33, %v561_v13  ;;  %vm838_vm1 = vcmp.eq.s32.totalorder %v416_v50, 16 }
 0x10b   : > { %v1526_v14 = vpack.c.bf16 %v1191_v10, %v1189_v54  ;;  %v563_v16 = vsel %vm480_vm15, %v2145_v3, 0.0  ;;  %v710_v57 = vsel %vm627_vm0, %v2163_v27, 0.0  ;;  %v919_v59 = vsel %vm836_vm14, %v2153_v11, 0.0 }
 0x10c   : > { %v774_v60 = vadd.f32 %v710_v57, %v563_v16  ;;  %v921_v61 = vsel %vm838_vm1, %v2153_v11, 0.0  ;;  %v983_v62 = vadd.f32 %v919_v59, %v772_v36  ;;  %vm1047_vm2 = vcmp.eq.s32.totalorder %v414_v48, 17 }
 0x10d   : > { %1527 = vmatpush1.bf16.msra.mxu0 %v1526_v14  ;;  %vm1049_vm3 = vcmp.eq.s32.totalorder %v416_v50, 17  ;;  %v1130_v63 = vsel %vm1047_vm2, %v2170_v30, 0.0  ;;  %v413_v26 = vsub.s32 %v2110_v51, %v2131_v58  ;;  %v415_v0 = vsub.s32 %v2113_v52, %v2131_v58 }
 0x10e   : > { %v985_v1 = vadd.f32 %v921_v61, %v774_v60  ;;  %v1132_v32 = vsel %vm1049_vm3, %v2170_v30, 0.0  ;;  %v1194_v4 = vadd.f32 %v1130_v63, %v983_v62  ;;  %v418_v6 = vsub.s32 %v2116_v53, %v2123_v55 }
 0x10f   : > { %vm477_vm4 = vcmp.eq.s32.totalorder %v413_v26, 0  ;;  %vm479_vm5 = vcmp.eq.s32.totalorder %v415_v0, 0  ;;  %vm624_vm6 = vcmp.eq.s32.totalorder %v413_v26, 1  ;;  %vm626_vm7 = vcmp.eq.s32.totalorder %v415_v0, 1 }
 0x110   : > { %v1196_v12 = vadd.f32 %v1132_v32, %v985_v1  ;;  %v560_v20 = vsel %vm477_vm4, %v2142_v2, 0.0  ;;  %v562_v23 = vsel %vm479_vm5, %v2142_v2, 0.0  ;;  %v707_v51 = vsel %vm624_vm6, %v2157_v19, 0.0 }
 0x111   : > { %v709_v52 = vsel %vm626_vm7, %v2157_v19, 0.0  ;;  %v771_v29 = vadd.f32 %v707_v51, %v560_v20  ;;  %vm835_vm8 = vcmp.eq.s32.totalorder %v413_v26, 16  ;;  %vm837_vm9 = vcmp.eq.s32.totalorder %v415_v0, 16 }
 0x112   : > { %v1528_v9 = vpack.c.bf16 %v1196_v12, %v1194_v4  ;;  %v773_v31 = vadd.f32 %v709_v52, %v562_v23  ;;  %v918_v34 = vsel %vm835_vm8, %v2150_v7, 0.0  ;;  %v920_v24 = vsel %vm837_vm9, %v2150_v7, 0.0 }
 0x113   : > { %v982_v25 = vadd.f32 %v918_v34, %v771_v29  ;;  %vm1046_vm10 = vcmp.eq.s32.totalorder %v413_v26, 17  ;;  %vm1048_vm11 = vcmp.eq.s32.totalorder %v415_v0, 17  ;;  %v420_v35 = vsub.s32 %v2126_v56, %v2123_v55 }
 0x114   : > { %1529 = vmatprep.subr.bf16.mxu0 %v1528_v9  ;;  %v984_v37 = vadd.f32 %v920_v24, %v773_v31  ;;  %v1129_v38 = vsel %vm1046_vm10, %v2166_v28, 0.0  ;;  %v1131_v39 = vsel %vm1048_vm11, %v2166_v28, 0.0  ;;  %vm482_vm12 = vcmp.eq.s32.totalorder %v418_v6, 0 }
 0x115   : > { %v1193_v8 = vadd.f32 %v1129_v38, %v982_v25  ;;  %vm484_vm13 = vcmp.eq.s32.totalorder %v420_v35, 0  ;;  %v565_v21 = vsel %vm482_vm12, %v2145_v3, 0.0  ;;  %vm629_vm14 = vcmp.eq.s32.totalorder %v418_v6, 1 }
 0x116   : > { %v1195_v40 = vadd.f32 %v1131_v39, %v984_v37  ;;  %v567_v41 = vsel %vm484_vm13, %v2145_v3, 0.0  ;;  %vm631_vm15 = vcmp.eq.s32.totalorder %v420_v35, 1  ;;  %v712_v42 = vsel %vm629_vm14, %v2163_v27, 0.0 }
 0x117   : > { %v714_v43 = vsel %vm631_vm15, %v2163_v27, 0.0  ;;  %v776_v44 = vadd.f32 %v712_v42, %v565_v21  ;;  %vm840_vm0 = vcmp.eq.s32.totalorder %v418_v6, 16  ;;  %vm842_vm1 = vcmp.eq.s32.totalorder %v420_v35, 16 }
 0x118   : > { %v1530_v46 = vpack.c.bf16 %v1195_v40, %v1193_v8  ;;  %v778_v22 = vadd.f32 %v714_v43, %v567_v41  ;;  %v923_v45 = vsel %vm840_vm0, %v2153_v11, 0.0  ;;  %v925_v47 = vsel %vm842_vm1, %v2153_v11, 0.0 }
 0x119   : > { %v987_v48 = vadd.f32 %v923_v45, %v776_v44  ;;  %vm1051_vm2 = vcmp.eq.s32.totalorder %v418_v6, 17  ;;  %vm1053_vm3 = vcmp.eq.s32.totalorder %v420_v35, 17  ;;  %v417_v17 = vsub.s32 %v2116_v53, %v2131_v58 }
 0x11a   : > { %1531 = vmatpush1.bf16.msra.mxu0 %v1530_v46  ;;  %v989_v18 = vadd.f32 %v925_v47, %v778_v22  ;;  %v1134_v49 = vsel %vm1051_vm2, %v2170_v30, 0.0  ;;  %v1136_v15 = vsel %vm1053_vm3, %v2170_v30, 0.0  ;;  %v419_v50 = vsub.s32 %v2126_v56, %v2131_v58 }
 0x11b   : > { %v1198_v54 = vadd.f32 %v1134_v49, %v987_v48  ;;  %vm481_vm4 = vcmp.eq.s32.totalorder %v417_v17, 0  ;;  %vm628_vm5 = vcmp.eq.s32.totalorder %v417_v17, 1  ;;  %vm839_vm6 = vcmp.eq.s32.totalorder %v417_v17, 16 }
 0x11c   : > { %v1200_v10 = vadd.f32 %v1136_v15, %v989_v18  ;;  %vm483_vm7 = vcmp.eq.s32.totalorder %v419_v50, 0  ;;  %v564_v13 = vsel %vm481_vm4, %v2142_v2, 0.0  ;;  %vm630_vm8 = vcmp.eq.s32.totalorder %v419_v50, 1 }
 0x11d   : > { %v566_v53 = vsel %vm483_vm7, %v2142_v2, 0.0  ;;  %v711_v33 = vsel %vm628_vm5, %v2157_v19, 0.0  ;;  %v713_v36 = vsel %vm630_vm8, %v2157_v19, 0.0  ;;  %vm841_vm9 = vcmp.eq.s32.totalorder %v419_v50, 16 }
 0x11e   : > { %v1532_v14 = vpack.c.bf16 %v1200_v10, %v1198_v54  ;;  %v775_v16 = vadd.f32 %v711_v33, %v564_v13  ;;  %v777_v57 = vadd.f32 %v713_v36, %v566_v53  ;;  %v922_v56 = vsel %vm839_vm6, %v2150_v7, 0.0 }
 0x11f   : > { %v924_v59 = vsel %vm841_vm9, %v2150_v7, 0.0  ;;  %vm1050_vm10 = vcmp.eq.s32.totalorder %v417_v17, 17  ;;  %vm1052_vm11 = vcmp.eq.s32.totalorder %v419_v50, 17  ;;  %v351_v60 = vadd.s32 176, %v2028_v5 }
 0x120   : > { %1533 = vmatprep.subr.bf16.mxu0 %v1532_v14  ;;  %v986_v61 = vadd.f32 %v922_v56, %v775_v16  ;;  %v988_v62 = vadd.f32 %v924_v59, %v777_v57  ;;  %v1133_v63 = vsel %vm1050_vm10, %v2166_v28, 0.0  ;;  %v1135_v26 = vsel %vm1052_vm11, %v2166_v28, 0.0 }
 0x121   : > { %v352_v0 = vadd.s32 184, %v2028_v5  ;;  %v422_v1 = vsub.s32 %v351_v60, %v2123_v55  ;;  %v421_v32 = vsub.s32 %v351_v60, %v2131_v58  ;;  %v353_v4 = vadd.s32 192, %v2028_v5 }
 0x122   : > { %v1197_v6 = vadd.f32 %v1133_v63, %v986_v61  ;;  %v1199_v12 = vadd.f32 %v1135_v26, %v988_v62  ;;  %v354_v20 = vadd.s32 200, %v2028_v5  ;;  %v2442_v23 = vadd.s32 208, %v2028_v5 }
 0x123   : > { %v424_v51 = vsub.s32 %v352_v0, %v2123_v55  ;;  %vm486_vm12 = vcmp.eq.s32.totalorder %v422_v1, 0  ;;  %vm633_vm13 = vcmp.eq.s32.totalorder %v422_v1, 1  ;;  %vm844_vm14 = vcmp.eq.s32.totalorder %v422_v1, 16 }
 0x124   : > { %v1534_v52 = vpack.c.bf16 %v1199_v12, %v1197_v6  ;;  %v569_v29 = vsel %vm486_vm12, %v2145_v3, 0.0  ;;  %v716_v9 = vsel %vm633_vm13, %v2163_v27, 0.0  ;;  %v927_v31 = vsel %vm844_vm14, %v2153_v11, 0.0 }
 0x125   : > { %vm488_vm15 = vcmp.eq.s32.totalorder %v424_v51, 0  ;;  %vm635_vm0 = vcmp.eq.s32.totalorder %v424_v51, 1  ;;  %v780_v34 = vadd.f32 %v716_v9, %v569_v29  ;;  %vm846_vm1 = vcmp.eq.s32.totalorder %v424_v51, 16 }
 0x126   : > { %1535 = vmatpush1.bf16.msra.mxu0 %v1534_v52  ;;  %v571_v24 = vsel %vm488_vm15, %v2145_v3, 0.0  ;;  %v718_v25 = vsel %vm635_vm0, %v2163_v27, 0.0  ;;  %v929_v35 = vsel %vm846_vm1, %v2153_v11, 0.0  ;;  %vm1055_vm2 = vcmp.eq.s32.totalorder %v422_v1, 17 }
 0x127   : > { %v782_v37 = vadd.f32 %v718_v25, %v571_v24  ;;  %v991_v38 = vadd.f32 %v927_v31, %v780_v34  ;;  %vm1057_vm3 = vcmp.eq.s32.totalorder %v424_v51, 17  ;;  %v1138_v39 = vsel %vm1055_vm2, %v2170_v30, 0.0 }
 0x128   : > { %v1140_v8 = vsel %vm1057_vm3, %v2170_v30, 0.0  ;;  %v423_v21 = vsub.s32 %v352_v0, %v2131_v58  ;;  %vm485_vm4 = vcmp.eq.s32.totalorder %v421_v32, 0  ;;  %vm632_vm5 = vcmp.eq.s32.totalorder %v421_v32, 1 }
 0x129   : > { %v993_v40 = vadd.f32 %v929_v35, %v782_v37  ;;  %v1202_v41 = vadd.f32 %v1138_v39, %v991_v38  ;;  %v568_v42 = vsel %vm485_vm4, %v2142_v2, 0.0  ;;  %v715_v43 = vsel %vm632_vm5, %v2157_v19, 0.0 }
 0x12a   : > { %vm487_vm6 = vcmp.eq.s32.totalorder %v423_v21, 0  ;;  %vm634_vm7 = vcmp.eq.s32.totalorder %v423_v21, 1  ;;  %v779_v44 = vadd.f32 %v715_v43, %v568_v42  ;;  %vm843_vm8 = vcmp.eq.s32.totalorder %v421_v32, 16 }
 0x12b   : > { %v1204_v46 = vadd.f32 %v1140_v8, %v993_v40  ;;  %v570_v22 = vsel %vm487_vm6, %v2142_v2, 0.0  ;;  %v717_v45 = vsel %vm634_vm7, %v2157_v19, 0.0  ;;  %vm845_vm9 = vcmp.eq.s32.totalorder %v423_v21, 16 }
 0x12c   : > { %v781_v47 = vadd.f32 %v717_v45, %v570_v22  ;;  %v926_v48 = vsel %vm843_vm8, %v2150_v7, 0.0  ;;  %v928_v17 = vsel %vm845_vm9, %v2150_v7, 0.0  ;;  %vm1054_vm10 = vcmp.eq.s32.totalorder %v421_v32, 17 }
 0x12d   : > { %v1536_v18 = vpack.c.bf16 %v1204_v46, %v1202_v41  ;;  %v990_v49 = vadd.f32 %v926_v48, %v779_v44  ;;  %vm1056_vm11 = vcmp.eq.s32.totalorder %v423_v21, 17  ;;  %v1137_v15 = vsel %vm1054_vm10, %v2166_v28, 0.0 }
 0x12e   : > { %v992_v50 = vadd.f32 %v928_v17, %v781_v47  ;;  %v1139_v54 = vsel %vm1056_vm11, %v2166_v28, 0.0  ;;  %v426_v10 = vsub.s32 %v353_v4, %v2123_v55  ;;  %v428_v13 = vsub.s32 %v354_v20, %v2123_v55 }
 0x12f   : > { %1537 = vmatprep.subr.bf16.mxu0 %v1536_v18  ;;  %v1201_v53 = vadd.f32 %v1137_v15, %v990_v49  ;;  %v425_v33 = vsub.s32 %v353_v4, %v2131_v58  ;;  %v427_v36 = vsub.s32 %v354_v20, %v2131_v58  ;;  %v2467_v14 = vadd.s32 216, %v2028_v5 }
 0x130   : > { %v1203_v16 = vadd.f32 %v1139_v54, %v992_v50  ;;  %vm490_vm12 = vcmp.eq.s32.totalorder %v426_v10, 0  ;;  %vm492_vm13 = vcmp.eq.s32.totalorder %v428_v13, 0  ;;  %vm637_vm14 = vcmp.eq.s32.totalorder %v426_v10, 1 }
 0x131   : > { %v573_v57 = vsel %vm490_vm12, %v2145_v3, 0.0  ;;  %v575_v56 = vsel %vm492_vm13, %v2145_v3, 0.0  ;;  %vm639_vm15 = vcmp.eq.s32.totalorder %v428_v13, 1  ;;  %v720_v59 = vsel %vm637_vm14, %v2163_v27, 0.0 }
 0x132   : > { %v1538_v60 = vpack.c.bf16 %v1203_v16, %v1201_v53  ;;  %v722_v61 = vsel %vm639_vm15, %v2163_v27, 0.0  ;;  %v784_v62 = vadd.f32 %v720_v59, %v573_v57  ;;  %vm848_vm0 = vcmp.eq.s32.totalorder %v426_v10, 16 }
 0x133   : > { %v786_v63 = vadd.f32 %v722_v61, %v575_v56  ;;  %vm850_vm1 = vcmp.eq.s32.totalorder %v428_v13, 16  ;;  %v931_v26 = vsel %vm848_vm0, %v2153_v11, 0.0  ;;  %vm1059_vm2 = vcmp.eq.s32.totalorder %v426_v10, 17 }
 0x134   : > { %1539 = vmatpush1.bf16.msra.mxu0 %v1538_v60  ;;  %v933_v0 = vsel %vm850_vm1, %v2153_v11, 0.0  ;;  %v995_v1 = vadd.f32 %v931_v26, %v784_v62  ;;  %vm1061_vm3 = vcmp.eq.s32.totalorder %v428_v13, 17  ;;  %v1142_v32 = vsel %vm1059_vm2, %v2170_v30, 0.0 }
 0x135   : > { %v997_v4 = vadd.f32 %v933_v0, %v786_v63  ;;  %v1144_v6 = vsel %vm1061_vm3, %v2170_v30, 0.0  ;;  %vm489_vm4 = vcmp.eq.s32.totalorder %v425_v33, 0  ;;  %vm491_vm5 = vcmp.eq.s32.totalorder %v427_v36, 0 }
 0x136   : > { %v1206_v12 = vadd.f32 %v1142_v32, %v995_v1  ;;  %v572_v20 = vsel %vm489_vm4, %v2142_v2, 0.0  ;;  %v574_v51 = vsel %vm491_vm5, %v2142_v2, 0.0  ;;  %vm636_vm6 = vcmp.eq.s32.totalorder %v425_v33, 1 }
 0x137   : > { %v1208_v52 = vadd.f32 %v1144_v6, %v997_v4  ;;  %vm638_vm7 = vcmp.eq.s32.totalorder %v427_v36, 1  ;;  %v719_v29 = vsel %vm636_vm6, %v2157_v19, 0.0  ;;  %vm847_vm8 = vcmp.eq.s32.totalorder %v425_v33, 16 }
 0x138   : > { %v721_v9 = vsel %vm638_vm7, %v2157_v19, 0.0  ;;  %v783_v31 = vadd.f32 %v719_v29, %v572_v20  ;;  %vm849_vm9 = vcmp.eq.s32.totalorder %v427_v36, 16  ;;  %v930_v34 = vsel %vm847_vm8, %v2150_v7, 0.0 }
 0x139   : > { %v1540_v24 = vpack.c.bf16 %v1208_v52, %v1206_v12  ;;  %v785_v25 = vadd.f32 %v721_v9, %v574_v51  ;;  %v932_v35 = vsel %vm849_vm9, %v2150_v7, 0.0  ;;  %vm1058_vm10 = vcmp.eq.s32.totalorder %v425_v33, 17 }
 0x13a   : > { %v994_v37 = vadd.f32 %v930_v34, %v783_v31  ;;  %vm1060_vm11 = vcmp.eq.s32.totalorder %v427_v36, 17  ;;  %v1141_v38 = vsel %vm1058_vm10, %v2166_v28, 0.0  ;;  %v430_v39 = vsub.s32 %v2442_v23, %v2123_v55 }
 0x13b   : > { %1541 = vmatprep.subr.bf16.mxu0 %v1540_v24  ;;  %v996_v8 = vadd.f32 %v932_v35, %v785_v25  ;;  %v1143_v21 = vsel %vm1060_vm11, %v2166_v28, 0.0  ;;  %v432_v40 = vsub.s32 %v2467_v14, %v2123_v55  ;;  %v429_v41 = vsub.s32 %v2442_v23, %v2131_v58 }
 0x13c   : > { %v1205_v42 = vadd.f32 %v1141_v38, %v994_v37  ;;  %vm494_vm12 = vcmp.eq.s32.totalorder %v430_v39, 0  ;;  %vm641_vm13 = vcmp.eq.s32.totalorder %v430_v39, 1  ;;  %vm852_vm14 = vcmp.eq.s32.totalorder %v430_v39, 16 }
 0x13d   : > { %v1207_v43 = vadd.f32 %v1143_v21, %v996_v8  ;;  %vm496_vm15 = vcmp.eq.s32.totalorder %v432_v40, 0  ;;  %v577_v44 = vsel %vm494_vm12, %v2145_v3, 0.0  ;;  %vm643_vm0 = vcmp.eq.s32.totalorder %v432_v40, 1 }
 0x13e   : > { %v579_v46 = vsel %vm496_vm15, %v2145_v3, 0.0  ;;  %v724_v22 = vsel %vm641_vm13, %v2163_v27, 0.0  ;;  %v726_v45 = vsel %vm643_vm0, %v2163_v27, 0.0  ;;  %vm854_vm1 = vcmp.eq.s32.totalorder %v432_v40, 16 }
 0x13f   : > { %v1542_v47 = vpack.c.bf16 %v1207_v43, %v1205_v42  ;;  %v788_v48 = vadd.f32 %v724_v22, %v577_v44  ;;  %v790_v17 = vadd.f32 %v726_v45, %v579_v46  ;;  %v935_v23 = vsel %vm852_vm14, %v2153_v11, 0.0 }
 0x140   : > { %v937_v18 = vsel %vm854_vm1, %v2153_v11, 0.0  ;;  %vm1063_vm2 = vcmp.eq.s32.totalorder %v430_v39, 17  ;;  %vm1065_vm3 = vcmp.eq.s32.totalorder %v432_v40, 17  ;;  %v431_v49 = vsub.s32 %v2467_v14, %v2131_v58 }
 0x141   : > { %1543 = vmatpush1.bf16.msra.mxu0 %v1542_v47  ;;  %v999_v15 = vadd.f32 %v935_v23, %v788_v48  ;;  %v1001_v50 = vadd.f32 %v937_v18, %v790_v17  ;;  %v1146_v54 = vsel %vm1063_vm2, %v2170_v30, 0.0  ;;  %v1148_v10 = vsel %vm1065_vm3, %v2170_v30, 0.0 }
 0x142   : > { %vm493_vm4 = vcmp.eq.s32.totalorder %v429_v41, 0  ;;  %vm495_vm5 = vcmp.eq.s32.totalorder %v431_v49, 0  ;;  %vm640_vm6 = vcmp.eq.s32.totalorder %v429_v41, 1  ;;  %vm642_vm7 = vcmp.eq.s32.totalorder %v431_v49, 1 }
 0x143   : > { %v1210_v13 = vadd.f32 %v1146_v54, %v999_v15  ;;  %v1212_v53 = vadd.f32 %v1148_v10, %v1001_v50  ;;  %v576_v33 = vsel %vm493_vm4, %v2142_v2, 0.0  ;;  %v578_v36 = vsel %vm495_vm5, %v2142_v2, 0.0 }
 0x144   : > { %v723_v16 = vsel %vm640_vm6, %v2157_v19, 0.0  ;;  %v725_v14 = vsel %vm642_vm7, %v2157_v19, 0.0  ;;  %vm851_vm8 = vcmp.eq.s32.totalorder %v429_v41, 16  ;;  %vm853_vm9 = vcmp.eq.s32.totalorder %v431_v49, 16 }
 0x145   : > { %v1544_v57 = vpack.c.bf16 %v1212_v53, %v1210_v13  ;;  %v787_v56 = vadd.f32 %v723_v16, %v576_v33  ;;  %v789_v59 = vadd.f32 %v725_v14, %v578_v36  ;;  %v934_v60 = vsel %vm851_vm8, %v2150_v7, 0.0 }
 0x146   : > { %v936_v61 = vsel %vm853_vm9, %v2150_v7, 0.0  ;;  %vm1062_vm10 = vcmp.eq.s32.totalorder %v429_v41, 17  ;;  %vm1064_vm11 = vcmp.eq.s32.totalorder %v431_v49, 17  ;;  %v357_v62 = vadd.s32 224, %v2028_v5 }
 0x147   : > { %1545 = vmatprep.subr.bf16.mxu0 %v1544_v57  ;;  %v998_v63 = vadd.f32 %v934_v60, %v787_v56  ;;  %v1000_v26 = vadd.f32 %v936_v61, %v789_v59  ;;  %v1145_v0 = vsel %vm1062_vm10, %v2166_v28, 0.0  ;;  %v1147_v1 = vsel %vm1064_vm11, %v2166_v28, 0.0 }
 0x148   : > { %v358_v32 = vadd.s32 232, %v2028_v5  ;;  %v434_v4 = vsub.s32 %v357_v62, %v2123_v55  ;;  %v433_v6 = vsub.s32 %v357_v62, %v2131_v58  ;;  %v359_v51 = vadd.s32 240, %v2028_v5 }
 0x149   : > { %v1209_v12 = vadd.f32 %v1145_v0, %v998_v63  ;;  %v1211_v20 = vadd.f32 %v1147_v1, %v1000_v26  ;;  %v360_v52 = vadd.s32 248, %v2028_v5 }
 0x14a   : > { %v436_v29 = vsub.s32 %v358_v32, %v2123_v55  ;;  %vm498_vm12 = vcmp.eq.s32.totalorder %v434_v4, 0  ;;  %vm645_vm13 = vcmp.eq.s32.totalorder %v434_v4, 1  ;;  %vm856_vm14 = vcmp.eq.s32.totalorder %v434_v4, 16 }
 0x14b   : > { %v1546_v9 = vpack.c.bf16 %v1211_v20, %v1209_v12  ;;  %v581_v31 = vsel %vm498_vm12, %v2145_v3, 0.0  ;;  %v728_v34 = vsel %vm645_vm13, %v2163_v27, 0.0  ;;  %v939_v24 = vsel %vm856_vm14, %v2153_v11, 0.0 }
 0x14c   : > { %vm500_vm15 = vcmp.eq.s32.totalorder %v436_v29, 0  ;;  %vm647_vm0 = vcmp.eq.s32.totalorder %v436_v29, 1  ;;  %v792_v25 = vadd.f32 %v728_v34, %v581_v31  ;;  %vm858_vm1 = vcmp.eq.s32.totalorder %v436_v29, 16 }
 0x14d   : > { %1547 = vmatpush1.bf16.msra.mxu0 %v1546_v9  ;;  %v583_v35 = vsel %vm500_vm15, %v2145_v3, 0.0  ;;  %v730_v5 = vsel %vm647_vm0, %v2163_v27, 0.0  ;;  %v941_v37 = vsel %vm858_vm1, %v2153_v11, 0.0  ;;  %vm1067_vm2 = vcmp.eq.s32.totalorder %v434_v4, 17 }
 0x14e   : > { %v794_v38 = vadd.f32 %v730_v5, %v583_v35  ;;  %v1003_v39 = vadd.f32 %v939_v24, %v792_v25  ;;  %vm1069_vm3 = vcmp.eq.s32.totalorder %v436_v29, 17  ;;  %v1150_v8 = vsel %vm1067_vm2, %v2170_v30, 0.0  ;;  %v1221_v25 = vld [vmem:[%s2328_s24] sm:$0xff]  ;;  %v1294_v35 = vld [vmem:[%s2022_s19] sm:$0xff] }
 0x14f   : > { %v1152_v21 = vsel %vm1069_vm3, %v2170_v30, 0.0  ;;  %v435_v40 = vsub.s32 %v358_v32, %v2131_v58  ;;  %vm497_vm4 = vcmp.eq.s32.totalorder %v433_v6, 0  ;;  %vm644_vm5 = vcmp.eq.s32.totalorder %v433_v6, 1 }
 0x150   : > { %v1005_v41 = vadd.f32 %v941_v37, %v794_v38  ;;  %v1214_v42 = vadd.f32 %v1150_v8, %v1003_v39  ;;  %v580_v43 = vsel %vm497_vm4, %v2142_v2, 0.0  ;;  %v727_v44 = vsel %vm644_vm5, %v2157_v19, 0.0 }
 0x151   : > { %vm499_vm6 = vcmp.eq.s32.totalorder %v435_v40, 0  ;;  %vm646_vm7 = vcmp.eq.s32.totalorder %v435_v40, 1  ;;  %v791_v46 = vadd.f32 %v727_v44, %v580_v43  ;;  %vm855_vm8 = vcmp.eq.s32.totalorder %v433_v6, 16 }
 0x152   : > { %v1216_v22 = vadd.f32 %v1152_v21, %v1005_v41  ;;  %v582_v45 = vsel %vm499_vm6, %v2142_v2, 0.0  ;;  %v729_v47 = vsel %vm646_vm7, %v2157_v19, 0.0  ;;  %vm857_vm9 = vcmp.eq.s32.totalorder %v435_v40, 16 }
 0x153   : > { %v793_v48 = vadd.f32 %v729_v47, %v582_v45  ;;  %v938_v17 = vsel %vm855_vm8, %v2150_v7, 0.0  ;;  %v940_v23 = vsel %vm857_vm9, %v2150_v7, 0.0  ;;  %vm1066_vm10 = vcmp.eq.s32.totalorder %v433_v6, 17 }
 0x154   : > { %v1548_v18 = vpack.c.bf16 %v1216_v22, %v1214_v42  ;;  %v1002_v49 = vadd.f32 %v938_v17, %v791_v46  ;;  %vm1068_vm11 = vcmp.eq.s32.totalorder %v435_v40, 17  ;;  %v1149_v15 = vsel %vm1066_vm10, %v2166_v28, 0.0 }
 0x155   : > { %v1004_v50 = vadd.f32 %v940_v23, %v793_v48  ;;  %v1151_v54 = vsel %vm1068_vm11, %v2166_v28, 0.0  ;;  %v438_v10 = vsub.s32 %v359_v51, %v2123_v55  ;;  %v440_v13 = vsub.s32 %v360_v52, %v2123_v55 }
 0x156   : > { %1549 = vmatprep.subr.bf16.mxu0 %v1548_v18  ;;  %v1213_v53 = vadd.f32 %v1149_v15, %v1002_v49  ;;  %v437_v33 = vsub.s32 %v359_v51, %v2131_v58  ;;  %v439_v36 = vsub.s32 %v360_v52, %v2131_v58  ;;  %v1306_v5 = vcombine.low %v1294_v35, %v1294_v35 }
 0x157   : > { %v1215_v16 = vadd.f32 %v1151_v54, %v1004_v50  ;;  %vm502_vm12 = vcmp.eq.s32.totalorder %v438_v10, 0  ;;  %vm504_vm13 = vcmp.eq.s32.totalorder %v440_v13, 0  ;;  %vm649_vm14 = vcmp.eq.s32.totalorder %v438_v10, 1 }
 0x158   : > { %v585_v14 = vsel %vm502_vm12, %v2145_v3, 0.0  ;;  %v587_v57 = vsel %vm504_vm13, %v2145_v3, 0.0  ;;  %vm651_vm15 = vcmp.eq.s32.totalorder %v440_v13, 1  ;;  %v732_v56 = vsel %vm649_vm14, %v2163_v27, 0.0 }
 0x159   : > { %v1550_v59 = vpack.c.bf16 %v1215_v16, %v1213_v53  ;;  %v734_v55 = vsel %vm651_vm15, %v2163_v27, 0.0  ;;  %v796_v60 = vadd.f32 %v732_v56, %v585_v14  ;;  %vm860_vm0 = vcmp.eq.s32.totalorder %v438_v10, 16 }
 0x15a   : > { %v798_v61 = vadd.f32 %v734_v55, %v587_v57  ;;  %vm862_vm1 = vcmp.eq.s32.totalorder %v440_v13, 16  ;;  %v943_v58 = vsel %vm860_vm0, %v2153_v11, 0.0  ;;  %vm1071_vm2 = vcmp.eq.s32.totalorder %v438_v10, 17 }
 0x15b   : > { %1551 = vmatpush1.bf16.msra.mxu0 %v1550_v59  ;;  %v945_v62 = vsel %vm862_vm1, %v2153_v11, 0.0  ;;  %v1007_v63 = vadd.f32 %v943_v58, %v796_v60  ;;  %vm1073_vm3 = vcmp.eq.s32.totalorder %v440_v13, 17  ;;  %v1154_v3 = vsel %vm1071_vm2, %v2170_v30, 0.0 }
 0x15c   : > { %v1009_v26 = vadd.f32 %v945_v62, %v798_v61  ;;  %v1156_v0 = vsel %vm1073_vm3, %v2170_v30, 0.0  ;;  %vm501_vm4 = vcmp.eq.s32.totalorder %v437_v33, 0  ;;  %vm503_vm5 = vcmp.eq.s32.totalorder %v439_v36, 0 }
 0x15d   : > { %v1218_v27 = vadd.f32 %v1154_v3, %v1007_v63  ;;  %v584_v1 = vsel %vm501_vm4, %v2142_v2, 0.0  ;;  %v586_v32 = vsel %vm503_vm5, %v2142_v2, 0.0  ;;  %vm648_vm6 = vcmp.eq.s32.totalorder %v437_v33, 1 }
 0x15e   : > { %v1220_v4 = vadd.f32 %v1156_v0, %v1009_v26  ;;  %vm650_vm7 = vcmp.eq.s32.totalorder %v439_v36, 1  ;;  %v731_v6 = vsel %vm648_vm6, %v2157_v19, 0.0  ;;  %vm859_vm8 = vcmp.eq.s32.totalorder %v437_v33, 16 }
 0x15f   : > { %v733_v11 = vsel %vm650_vm7, %v2157_v19, 0.0  ;;  %v795_v12 = vadd.f32 %v731_v6, %v584_v1  ;;  %vm861_vm9 = vcmp.eq.s32.totalorder %v439_v36, 16  ;;  %v942_v30 = vsel %vm859_vm8, %v2150_v7, 0.0 }
 0x160   : > { %v1552_v20 = vpack.c.bf16 %v1220_v4, %v1218_v27  ;;  %v797_v51 = vadd.f32 %v733_v11, %v586_v32  ;;  %v944_v52 = vsel %vm861_vm9, %v2150_v7, 0.0  ;;  %vm1070_vm10 = vcmp.eq.s32.totalorder %v437_v33, 17 }
 0x161   : > { %v1006_v2 = vadd.f32 %v942_v30, %v795_v12  ;;  %vm1072_vm11 = vcmp.eq.s32.totalorder %v439_v36, 17  ;;  %v1153_v29 = vsel %vm1070_vm10, %v2166_v28, 0.0 }
 0x162   : > { %1553 = vmatprep.subr.bf16.mxu0 %v1552_v20  ;;  %v1008_v9 = vadd.f32 %v944_v52, %v797_v51  ;;  %v1155_v31 = vsel %vm1072_vm11, %v2166_v28, 0.0 }
 0x163   : > { %v1217_v19 = vadd.f32 %v1153_v29, %v1006_v2 }
 0x164   : > { %v1219_v34 = vadd.f32 %v1155_v31, %v1008_v9 }
 0x166   : > { %v1554_v24 = vpack.c.bf16 %v1219_v34, %v1217_v19 }
 0x168   : > { %1555 = vmatpush1.bf16.msra.mxu0 %v1554_v24 }
 0x16b   : > { %1288 = vmatmul.mubr.f32.vlgmr.msra.gmra.mrb[0].mxu0 %v1221_v25 }
 0x23e   : > { %v1289_v7 = vpop.f32.mrb[0].mxu0 }
 0x23f   : > { %v1297_v37 = vrot.slane %v1289_v7, 4  ;;  %v1303_v38 = vsub.f32 1.0, %v1289_v7  ;;  %v1291_v39 = vpop.f32.mrb[1].mxu0 }
 0x240   : > { %v1298_v8 = vrot.slane %v1291_v39, 4  ;;  %v1304_v21 = vsub.f32 1.0, %v1291_v39 }
 0x241   : > { %v1301_v40 = vmul.f32 %v1297_v37, %v1289_v7  ;;  %v1308_v28 = vmul.f32 %v1306_v5, %v1303_v38 }
 0x242   : > { %v1302_v41 = vmul.f32 %v1298_v8, %v1291_v39  ;;  %v1309_v42 = vmul.f32 %v1304_v21, %v1294_v35 }
 0x243   : > { %v1310_v43 = vadd.f32 %v1308_v28, %v1301_v40 }
 0x244   : > { %v1311_v44 = vadd.f32 %v1309_v42, %v1302_v41 }
 0x246   : > { %v1314_v46 = vcombine.high %v1310_v43, %v1311_v44 }
 0x248   : > { %1316 = vst [vmem:[%s281_s30] sm:$0xff] %v1314_v46 }
 0x249   : > { %1735 = shalt.err (!%p1732_p6)
}
 0x24a   : > { %s1736_s10 = scalar_lea.hbm %s2561_s23, 128  ;;  %s1740_s26 = scalar_lea.hbm %s2613_s3, 256 }
 0x24b   : > { %p1737_p2 = scmp.ne.s32.totalorder %s2561_s23, %s1736_s10  ;;  %p1741_p5 = scmp.lt.u32.totalorder %s2561_s23, %s2613_s3 }
 0x24c   : > { %p1742_p11 = scmp.lt.u32.totalorder %s1740_s26, %s1736_s10  ;;  %p1744_p13 = scmp.lt.u32.totalorder %s1736_s10, %s2561_s23 }
 0x24d   : > { %p1738_p0 = pnand %p1737_p2, %p2647_p7 }
 0x24e   : > { %p1743_p4 = por %p1742_p11, %p1741_p5 }
 0x24f   : > { %p1739_p3 = pneg %p1738_p0 }
 0x250   : > { %p1745_p10 = por %p1744_p13, %p1743_p4 }
 0x252   : > { %p1746_p12 = pnand %p1745_p10, %p1739_p3 }
 0x254   : > { %1749 = shalt.err (!%p1746_p12)
}
 0x255   : > { %1564 = dma.vmem_to_hbm [thread:$0]  (%p2647_p7), %s2563_s6, 128, %s2561_s23, %s1318_s1  }
 0x256 PF: > { %s1346_s0 = sand.u32 1, %s1788_s12   ;;  %p2648_p1 = scmp.ne.s32.totalorder %s2628_s27, 0 }
 0x257   : > { %p2649_p8 = scmp.ge.s32.totalorder %s1808_s17, 2  ;;  %s1347_s4 = scalar_lea.sflag [#allocation4], %s1346_s0 }
 0x259   : > { %p1577_p9 = pnand %p2649_p8, %p2648_p1 }
 0x25b   : > { %1783 = dma.done.wait (!%p1577_p9), %s1347_s4, 128  }
 0x25c   : > { %1785 = vsyncadd (!%p1577_p9), %s1347_s4, 4294967168  ;;  %s22_s17 = sadd.s32 1, %s1808_s17   ;;  %s2650_s11 = sld [smem:[#allocation12_spill]] }
 0x25d   : > { %p19_p6 = scmp.ge.s32.totalorder %s22_s17, 4   ;;  %s2651_s14 = sld [smem:[#allocation14_spill]] }
 0x25e   : > { %s2652_s25 = sld [smem:[#allocation13_spill]]  ;;  %s2653_s12 = smov %s1792_s13 }
 0x25f   : > { %s2655_s15 = smov %s1804_s16  ;;  %21 = sbr.rel (!%p19_p6) target bundleno = 11 (0xb), region = 101 }
 0x262   : > { %s2654_s13 = smov %s2650_s11 }
 0x264   : > { %s2656_s16 = smov %s2652_s25 }
 0x266   :  { %1352 = vsyncpa [#allocation3], 1 }
 0x267   :  { %1354 = vsyncpa [#allocation3 + $0x1], 1 }
 0x268   :  { %1355 = vsyncpa [#allocation6], 1 }
 0x269   :  { %1357 = vsyncpa [#allocation6 + $0x1], 1 }
 0x26a   :  { %1358 = vsyncpa [#allocation4], 1 }
 0x26b   :  { %1360 = vsyncpa [#allocation4 + $0x1], 1 }

</bundles_post_ra>
